<compile_context>
chip_gen: v7x
topology: tpu7x:2x2x1
jax: 0.10.0
libtpu: 0.0.40
codegen_flags: <defaults>
</compile_context>

<pallas_src>
import functools

import jax
import jax.numpy as jnp
from jax import lax
from jax.experimental import pallas as pl
from jax.experimental.pallas import tpu as pltpu


def _fmix32(x):
    """murmur3 finalizer in wrapping int32 arithmetic (logical shifts via mask)."""
    x = x ^ ((x >> 16) & jnp.int32(0xFFFF))
    x = x * jnp.int32(-2048144789)          # 0x85EBCA6B
    x = x ^ ((x >> 13) & jnp.int32(0x7FFFF))
    x = x * jnp.int32(-1028477387)          # 0xC2B2AE35
    x = x ^ ((x >> 16) & jnp.int32(0xFFFF))
    return x


def _selfsup_loss_kernel(pos_frac_ref, seed_ref, feat_ref, trow_ref, loss_ref, *rest,
                         margin, tile, dump_u, matmul_dtype):
    if dump_u:
        u_ref, sim_ref, pt_ref = rest
    else:
        sim_ref, pt_ref = rest

    b = pl.program_id(0)
    n = sim_ref.shape[0]
    num_strips = n // tile

    # ---- L2 normalize over the channel axis (F.normalize, p=2, dim=1, eps=1e-12), in f32.
    f = feat_ref[0]                                            # (C, N) f32
    norm = jnp.sqrt(jnp.sum(f * f, axis=0, keepdims=True))     # (1, N)
    fn = f / jnp.maximum(norm, 1e-12)
    lhs = fn.astype(matmul_dtype)                              # bf16 -> single-pass MXU

    # ---- pair_sim = fn^T @ fn (contract channels on the MXU, f32 accumulate) -> VMEM scratch.
    sim_ref[...] = lax.dot_general(lhs, lhs, (((0,), (0,)), ((), ())),
                                   preferred_element_type=jnp.float32)   # (N, N)

    # ---- pair_target via direct label equality; column layout built in-kernel (XLU transpose).
    t_row = trow_ref[0]                                        # (1, N) i32
    t_mat = jnp.broadcast_to(t_row, (n, n))                    # [i, j] = t[j]
    pt_ref[...] = (jnp.transpose(t_mat) == t_mat).astype(jnp.int32)   # [i, j] = (t[i] == t[j])

    # ---- integer-domain sampling threshold: keep negative iff h24 > thr  (== u > 1 - pf,
    #      exact, since u = h24 * 2^-24 and (1-pf)*2^24 is an exact f32 product).
    pf = pos_frac_ref[0, 0]
    thr = jnp.floor((1.0 - pf) * jnp.float32(1 << 24)).astype(jnp.int32)
    seed_b = seed_ref[0] + b * jnp.int32(1000003)

    # ---- strip-mined elementwise phase: hash / mask / select / reduce, tile rows at a time.
    def strip(s, acc):
        r0 = pl.multiple_of(s * tile, tile)
        ps = sim_ref[pl.ds(r0, tile), :]                       # (T, N) f32
        pt = pt_ref[pl.ds(r0, tile), :] != 0                   # (T, N) bool

        rows = lax.broadcasted_iota(jnp.int32, (tile, n), 0) + r0
        cols = lax.broadcasted_iota(jnp.int32, (tile, n), 1)
        not_diag = rows != cols

        # stateless hash PRNG -> 24-bit uniforms (integer domain)
        h = (rows * jnp.int32(-1640531527)) ^ (cols * jnp.int32(-862048943)) ^ seed_b
        h = _fmix32(_fmix32(h))
        h24 = h & jnp.int32(0x00FFFFFF)                        # in [0, 2^24)

        keep = jnp.logical_and(jnp.logical_or(pt, h24 > thr), not_diag)
        closs = jnp.where(pt, 1.0 - ps, jnp.maximum(ps - margin, 0.0))

        if dump_u:                                             # debug/testing path only
            u_ref[0, pl.ds(r0, tile), :] = h24.astype(jnp.float32) * (1.0 / (1 << 24))

        return acc + jnp.sum(jnp.where(keep, closs, 0.0))

    masked_sum = lax.fori_loop(0, num_strips, strip, jnp.float32(0.0), unroll=True)

    # lane-dense output block: one unmasked vst, wrapper reads lane 0.
    loss_ref[...] = jnp.full(loss_ref.shape, masked_sum, dtype=jnp.float32)


def _vmem_limit_bytes(C, N, tile, dump_u):
    dbl_in = 2 * 4 * (C * N + N)            # double-buffered feat + target blocks
    scratch = 2 * 4 * N * N                 # pair_sim (f32) + pair_target (i32) scratch
    strips = 8 * 4 * tile * N               # live per-strip temporaries
    out = 2 * 4 * 128                       # double-buffered (1,1,128) loss block
    if dump_u:
        out += 2 * 4 * N * N                # double-buffered (1,N,N) debug-u block
    est = dbl_in + scratch + strips + out
    # est + generous margin for compiler-internal scratch; cap below v7x's 64 MiB physical VMEM.
    return int(min(2 * est + (6 << 20), 48 << 20))


def _pick_tile(N):
    for t in (32, 16, 8):
        if N % t == 0:
            return t
    return N


@functools.partial(jax.jit, static_argnames=("margin", "debug_dump_u", "use_bf16"))
def selfsup_loss(feat, target, seed, margin=0.5, debug_dump_u=False, use_bf16=True):
    """feat: (B, C, N) f32, target: (B, N) int, seed: int32 scalar for the in-kernel hash PRNG."""
    B, C, N = feat.shape
    target = target.astype(jnp.int32)
    tile = _pick_tile(N)
    matmul_dtype = jnp.bfloat16 if use_bf16 else jnp.float32

    # Global positive fraction == mean over label-equality pairs (includes the diagonal, as in
    # the PyTorch reference). Scalar output; fuses under jit.
    pos_frac = jnp.mean((target[:, :, None] == target[:, None, :]).astype(jnp.float32))
    pos_frac_smem = pos_frac.reshape(1, 1)
    seed_arr = jnp.asarray(seed, dtype=jnp.int32).reshape(1)
    t_row = target.reshape(B, 1, N)

    kernel = functools.partial(_selfsup_loss_kernel, margin=float(margin), tile=tile,
                               dump_u=debug_dump_u, matmul_dtype=matmul_dtype)

    out_shapes = [jax.ShapeDtypeStruct((B, 1, 128), jnp.float32)]
    out_specs = [pl.BlockSpec((1, 1, 128), lambda b: (b, 0, 0))]
    if debug_dump_u:
        out_shapes.append(jax.ShapeDtypeStruct((B, N, N), jnp.float32))
        out_specs.append(pl.BlockSpec((1, N, N), lambda b: (b, 0, 0)))

    outs = pl.pallas_call(
        kernel,
        out_shape=tuple(out_shapes),
        grid_spec=pltpu.PrefetchScalarGridSpec(
            num_scalar_prefetch=0,
            grid=(B,),
            in_specs=[
                pl.BlockSpec(memory_space=pltpu.SMEM),          # pos_frac (1,1) f32
                pl.BlockSpec(memory_space=pltpu.SMEM),          # seed (1,) i32
                pl.BlockSpec((1, C, N), lambda b: (b, 0, 0)),   # feat block
                pl.BlockSpec((1, 1, N), lambda b: (b, 0, 0)),   # target (row layout only)
            ],
            out_specs=tuple(out_specs),
            scratch_shapes=[
                pltpu.VMEM((N, N), jnp.float32),                # pair_sim
                pltpu.VMEM((N, N), jnp.int32),                  # pair_target
            ],
        ),
        compiler_params=pltpu.CompilerParams(
            dimension_semantics=("parallel",),                  # batch axis megacore-parallel
            vmem_limit_bytes=_vmem_limit_bytes(C, N, tile, debug_dump_u),
        ),
    )(pos_frac_smem, seed_arr, feat, t_row)

    partial_sums = outs[0][:, 0, 0]                             # (B,)
    loss = 0.5 * jnp.sum(partial_sums) / (B * N * N)
    if debug_dump_u:
        return loss, outs[1], pos_frac
    return loss


def selfsup_loss_reference(feat, target, u, margin=0.5, pos_frac=None,
                           matmul_dtype=jnp.float32):
    """Pure-JAX reference mirroring the PyTorch forward, given explicit uniforms u."""
    fn = feat / jnp.maximum(
        jnp.sqrt(jnp.sum(feat * feat, axis=1, keepdims=True)), 1e-12)
    fnc = fn.astype(matmul_dtype)
    pair_sim = jnp.einsum('bcn,bcm->bnm', fnc, fnc, preferred_element_type=jnp.float32)
    pair_target = (target[:, :, None] == target[:, None, :]).astype(jnp.float32)
    cl = pair_target * (1.0 - pair_sim) + (1.0 - pair_target) * jax.nn.relu(pair_sim - margin)
    N = cl.shape[-1]
    diag_mask = (1.0 - jnp.eye(N, dtype=jnp.float32))[None]
    if pos_frac is None:
        pos_frac = jnp.mean(pair_target)
    sample_neg = u > (1.0 - pos_frac)
    sample_mask = jnp.logical_or(pair_target == 1.0, sample_neg).astype(jnp.float32)
    cl = diag_mask * sample_mask * cl
    return 0.5 * jnp.mean(cl)


if __name__ == "__main__":
    key = jax.random.PRNGKey(0)
    k_feat, k_tgt = jax.random.split(key, 2)

    B, C, N = 2, 32, 128          # batch, feature channels, points
    NUM_CLASSES = 5
    margin = 0.5
    seed = 1234

    feat = jax.random.normal(k_feat, (B, C, N), dtype=jnp.float32)
    target = jax.random.randint(k_tgt, (B, N), 0, NUM_CLASSES, dtype=jnp.int32)

    # ---- debug path: the kernel dumps the uniforms it actually used, so the pure-JAX reference
    #      evaluates with the identical sample mask (same bf16 matmul precision as the kernel).
    loss_dbg, u_used, pos_frac = selfsup_loss(feat, target, seed, margin=margin,
                                              debug_dump_u=True)
    loss_dbg = jax.block_until_ready(loss_dbg)
    u_used = jax.block_until_ready(u_used)
    pos_frac = jax.block_until_ready(pos_frac)
    ref = jax.block_until_ready(
        selfsup_loss_reference(feat, target, u_used, margin=margin, pos_frac=pos_frac,
                               matmul_dtype=jnp.bfloat16))
    assert jnp.allclose(loss_dbg, ref, rtol=2e-4, atol=1e-6), (loss_dbg, ref)

    # ---- production path: randoms generated in-kernel, no (B,N,N) HBM stream.
    loss1 = jax.block_until_ready(selfsup_loss(feat, target, seed, margin=margin))
    loss2 = jax.block_until_ready(selfsup_loss(feat, target, seed, margin=margin))
    assert bool(jnp.isfinite(loss1))
    assert bool(jnp.array_equal(loss1, loss2))   # same seed -> same loss

    # sanity bounds (computed with the same bf16 pair_sim the kernel uses):
    # masked loss lies between "positives only" and "all off-diagonal pairs kept".
    fn = feat / jnp.maximum(jnp.sqrt(jnp.sum(feat * feat, axis=1, keepdims=True)), 1e-12)
    fnb = fn.astype(jnp.bfloat16)
    ps = jnp.einsum('bcn,bcm->bnm', fnb, fnb, preferred_element_type=jnp.float32)
    pt = target[:, :, None] == target[:, None, :]
    cl = jnp.where(pt, 1.0 - ps, jax.nn.relu(ps - margin))
    dm = (1.0 - jnp.eye(N, dtype=jnp.float32))[None]
    upper = 0.5 * jnp.mean(dm * cl)
    lower = 0.5 * jnp.mean(dm * jnp.where(pt, cl, 0.0))
    assert float(lower) - 1e-4 <= float(loss1) <= float(upper) + 1e-4, (lower, loss1, upper)

    print("KERNEL_OK")
</pallas_src>

<mosaic_0001>
module attributes {stable_mosaic.version = 11 : i64} {
  func.func @_selfsup_loss_kernel(%arg0: i32, %arg1: memref<1x1xf32, #tpu.memory_space<smem>>, %arg2: memref<1xi32, #tpu.memory_space<smem>>, %arg3: memref<1x32x128xf32, #tpu.memory_space<vmem>>, %arg4: memref<1x1x128xi32, #tpu.memory_space<vmem>>, %arg5: memref<1x1x128xf32, #tpu.memory_space<vmem>>, %arg6: memref<1x128x128xf32, #tpu.memory_space<vmem>>, %arg7: memref<128x128xf32, #tpu.memory_space<vmem>>, %arg8: memref<128x128xi32, #tpu.memory_space<vmem>>) attributes {dimension_semantics = [#tpu.dimension_semantics<parallel>], iteration_bounds = array<i64: 2>, scalar_prefetch = 0 : i64, scratch_operands = 2 : i64, tpu.core_type = #tpu.core_type<tc>, window_params = [{transform_indices = @transform_0, window_bounds = array<i64: 1, 1>}, {transform_indices = @transform_1, window_bounds = array<i64: 1>}, {transform_indices = @transform_2, window_bounds = array<i64: 1, 32, 128>}, {transform_indices = @transform_3, window_bounds = array<i64: 1, 1, 128>}, {transform_indices = @transform_4, window_bounds = array<i64: 1, 1, 128>}, {transform_indices = @transform_5, window_bounds = array<i64: 1, 128, 128>}]} {
    %c0 = arith.constant 0 : index
    %c0_0 = arith.constant 0 : index
    %c0_1 = arith.constant 0 : index
    %0 = vector.load %arg3[%c0, %c0_0, %c0_1] : memref<1x32x128xf32, #tpu.memory_space<vmem>>, vector<1x32x128xf32>
    %1 = vector.shape_cast %0 : vector<1x32x128xf32> to vector<32x128xf32>
    %2 = arith.mulf %1, %1 : vector<32x128xf32>
    %cst = arith.constant dense<0.000000e+00> : vector<128xf32>
    %3 = vector.multi_reduction <add>, %2, %cst [0] : vector<32x128xf32> to vector<128xf32>
    %4 = vector.shape_cast %3 : vector<128xf32> to vector<1x128xf32>
    %5 = math.sqrt %4 : vector<1x128xf32>
    %cst_2 = arith.constant 9.99999996E-13 : f32
    %6 = vector.broadcast %cst_2 : f32 to vector<1x128xf32>
    %7 = arith.maximumf %5, %6 : vector<1x128xf32>
    %8 = vector.broadcast %7 : vector<1x128xf32> to vector<32x128xf32>
    %9 = arith.divf %1, %8 : vector<32x128xf32>
    %10 = arith.truncf %9 : vector<32x128xf32> to vector<32x128xbf16>
    %cst_3 = arith.constant dense<0.000000e+00> : vector<128x128xf32>
    %11 = tpu.matmul %10, %10, %cst_3 {dimension_numbers = #tpu.dot_dimension_numbers<[0], [0], [1], [1], [0, 1, 1, 1], [], []>} : vector<32x128xbf16>, vector<32x128xbf16>, vector<128x128xf32> -> vector<128x128xf32>
    %c0_4 = arith.constant 0 : index
    %c0_5 = arith.constant 0 : index
    %12 = vector.load %arg7[%c0_4, %c0_5] : memref<128x128xf32, #tpu.memory_space<vmem>>, vector<128x128xf32>
    tpu.vector_store %arg7[%c0_4, %c0_5], %11 {strides = array<i32>} : memref<128x128xf32, #tpu.memory_space<vmem>>, vector<128x128xf32>,
    %c0_6 = arith.constant 0 : index
    %c0_7 = arith.constant 0 : index
    %c0_8 = arith.constant 0 : index
    %13 = vector.load %arg4[%c0_6, %c0_7, %c0_8] : memref<1x1x128xi32, #tpu.memory_space<vmem>>, vector<1x1x128xi32>
    %14 = vector.shape_cast %13 : vector<1x1x128xi32> to vector<1x128xi32>
    %15 = vector.shape_cast %14 : vector<1x128xi32> to vector<1x128xi32>
    %16 = vector.broadcast %15 : vector<1x128xi32> to vector<128x128xi32>
    %17 = tpu.transpose %16, [1, 0] : vector<128x128xi32> -> vector<128x128xi32>
    %18 = arith.cmpi eq, %17, %16 : vector<128x128xi32>
    %19 = arith.extui %18 : vector<128x128xi1> to vector<128x128xi32>
    %c0_9 = arith.constant 0 : index
    %c0_10 = arith.constant 0 : index
    %20 = vector.load %arg8[%c0_9, %c0_10] : memref<128x128xi32, #tpu.memory_space<vmem>>, vector<128x128xi32>
    tpu.vector_store %arg8[%c0_9, %c0_10], %19 {strides = array<i32>} : memref<128x128xi32, #tpu.memory_space<vmem>>, vector<128x128xi32>,
    %c0_11 = arith.constant 0 : index
    %c0_12 = arith.constant 0 : index
    %21 = memref.load %arg1[%c0_11, %c0_12] : memref<1x1xf32, #tpu.memory_space<smem>>
    %cst_13 = arith.constant 1.000000e+00 : f32
    %22 = arith.subf %cst_13, %21 : f32
    %cst_14 = arith.constant 0x4B800000 : f32
    %23 = arith.mulf %22, %cst_14 : f32
    %24 = math.floor %23 : f32
    %25 = arith.fptosi %24 : f32 to i32
    %c0_15 = arith.constant 0 : index
    %26 = memref.load %arg2[%c0_15] : memref<1xi32, #tpu.memory_space<smem>>
    %c1000003_i32 = arith.constant 1000003 : i32
    %27 = arith.muli %arg0, %c1000003_i32 : i32
    %28 = arith.addi %26, %27 : i32
    %cst_16 = arith.constant 0.000000e+00 : f32
    %c0_i32 = arith.constant 0 : i32
    %c32_i32 = arith.constant 32 : i32
    %29 = arith.muli %c0_i32, %c32_i32 : i32
    %30 = tpu.assume_multiple %29, 32 : i32
    %31 = arith.index_cast %30 : i32 to index
    %c0_17 = arith.constant 0 : index
    %32 = vector.load %arg7[%31, %c0_17] : memref<128x128xf32, #tpu.memory_space<vmem>>, vector<32x128xf32>
    %33 = arith.index_cast %30 : i32 to index
    %c0_18 = arith.constant 0 : index
    %34 = vector.load %arg8[%33, %c0_18] : memref<128x128xi32, #tpu.memory_space<vmem>>, vector<32x128xi32>
    %c0_i32_19 = arith.constant 0 : i32
    %35 = vector.broadcast %c0_i32_19 : i32 to vector<32x128xi32>
    %36 = arith.cmpi ne, %34, %35 : vector<32x128xi32>
    %37 = tpu.iota {dimensions = array<i32: 0>} : vector<32x128xi32>
    %38 = vector.broadcast %30 : i32 to vector<32x128xi32>
    %39 = arith.addi %37, %38 : vector<32x128xi32>
    %40 = tpu.iota {dimensions = array<i32: 1>} : vector<32x128xi32>
    %41 = arith.cmpi ne, %39, %40 : vector<32x128xi32>
    %c-1640531527_i32 = arith.constant -1640531527 : i32
    %42 = vector.broadcast %c-1640531527_i32 : i32 to vector<32x128xi32>
    %43 = arith.muli %39, %42 : vector<32x128xi32>
    %c-862048943_i32 = arith.constant -862048943 : i32
    %44 = vector.broadcast %c-862048943_i32 : i32 to vector<32x128xi32>
    %45 = arith.muli %40, %44 : vector<32x128xi32>
    %46 = arith.xori %43, %45 : vector<32x128xi32>
    %47 = vector.broadcast %28 : i32 to vector<32x128xi32>
    %48 = arith.xori %46, %47 : vector<32x128xi32>
    %c16_i32 = arith.constant 16 : i32
    %49 = vector.broadcast %c16_i32 : i32 to vector<32x128xi32>
    %50 = arith.shrsi %48, %49 : vector<32x128xi32>
    %c65535_i32 = arith.constant 65535 : i32
    %51 = vector.broadcast %c65535_i32 : i32 to vector<32x128xi32>
    %52 = arith.andi %50, %51 : vector<32x128xi32>
    %53 = arith.xori %48, %52 : vector<32x128xi32>
    %c-2048144789_i32 = arith.constant -2048144789 : i32
    %54 = vector.broadcast %c-2048144789_i32 : i32 to vector<32x128xi32>
    %55 = arith.muli %53, %54 : vector<32x128xi32>
    %c13_i32 = arith.constant 13 : i32
    %56 = vector.broadcast %c13_i32 : i32 to vector<32x128xi32>
    %57 = arith.shrsi %55, %56 : vector<32x128xi32>
    %c524287_i32 = arith.constant 524287 : i32
    %58 = vector.broadcast %c524287_i32 : i32 to vector<32x128xi32>
    %59 = arith.andi %57, %58 : vector<32x128xi32>
    %60 = arith.xori %55, %59 : vector<32x128xi32>
    %c-1028477387_i32 = arith.constant -1028477387 : i32
    %61 = vector.broadcast %c-1028477387_i32 : i32 to vector<32x128xi32>
    %62 = arith.muli %60, %61 : vector<32x128xi32>
    %c16_i32_20 = arith.constant 16 : i32
    %63 = vector.broadcast %c16_i32_20 : i32 to vector<32x128xi32>
    %64 = arith.shrsi %62, %63 : vector<32x128xi32>
    %c65535_i32_21 = arith.constant 65535 : i32
    %65 = vector.broadcast %c65535_i32_21 : i32 to vector<32x128xi32>
    %66 = arith.andi %64, %65 : vector<32x128xi32>
    %67 = arith.xori %62, %66 : vector<32x128xi32>
    %c16_i32_22 = arith.constant 16 : i32
    %68 = vector.broadcast %c16_i32_22 : i32 to vector<32x128xi32>
    %69 = arith.shrsi %67, %68 : vector<32x128xi32>
    %c65535_i32_23 = arith.constant 65535 : i32
    %70 = vector.broadcast %c65535_i32_23 : i32 to vector<32x128xi32>
    %71 = arith.andi %69, %70 : vector<32x128xi32>
    %72 = arith.xori %67, %71 : vector<32x128xi32>
    %c-2048144789_i32_24 = arith.constant -2048144789 : i32
    %73 = vector.broadcast %c-2048144789_i32_24 : i32 to vector<32x128xi32>
    %74 = arith.muli %72, %73 : vector<32x128xi32>
    %c13_i32_25 = arith.constant 13 : i32
    %75 = vector.broadcast %c13_i32_25 : i32 to vector<32x128xi32>
    %76 = arith.shrsi %74, %75 : vector<32x128xi32>
    %c524287_i32_26 = arith.constant 524287 : i32
    %77 = vector.broadcast %c524287_i32_26 : i32 to vector<32x128xi32>
    %78 = arith.andi %76, %77 : vector<32x128xi32>
    %79 = arith.xori %74, %78 : vector<32x128xi32>
    %c-1028477387_i32_27 = arith.constant -1028477387 : i32
    %80 = vector.broadcast %c-1028477387_i32_27 : i32 to vector<32x128xi32>
    %81 = arith.muli %79, %80 : vector<32x128xi32>
    %c16_i32_28 = arith.constant 16 : i32
    %82 = vector.broadcast %c16_i32_28 : i32 to vector<32x128xi32>
    %83 = arith.shrsi %81, %82 : vector<32x128xi32>
    %c65535_i32_29 = arith.constant 65535 : i32
    %84 = vector.broadcast %c65535_i32_29 : i32 to vector<32x128xi32>
    %85 = arith.andi %83, %84 : vector<32x128xi32>
    %86 = arith.xori %81, %85 : vector<32x128xi32>
    %c16777215_i32 = arith.constant 16777215 : i32
    %87 = vector.broadcast %c16777215_i32 : i32 to vector<32x128xi32>
    %88 = arith.andi %86, %87 : vector<32x128xi32>
    %89 = vector.broadcast %25 : i32 to vector<32x128xi32>
    %90 = arith.cmpi sgt, %88, %89 : vector<32x128xi32>
    %91 = arith.ori %36, %90 : vector<32x128xi1>
    %92 = arith.andi %91, %41 : vector<32x128xi1>
    %cst_30 = arith.constant 1.000000e+00 : f32
    %93 = vector.broadcast %cst_30 : f32 to vector<32x128xf32>
    %94 = arith.subf %93, %32 : vector<32x128xf32>
    %cst_31 = arith.constant 5.000000e-01 : f32
    %95 = vector.broadcast %cst_31 : f32 to vector<32x128xf32>
    %96 = arith.subf %32, %95 : vector<32x128xf32>
    %cst_32 = arith.constant 0.000000e+00 : f32
    %97 = vector.broadcast %cst_32 : f32 to vector<32x128xf32>
    %98 = arith.maximumf %96, %97 : vector<32x128xf32>
    %99 = arith.select %36, %94, %98 : vector<32x128xi1>, vector<32x128xf32>
    %100 = arith.sitofp %88 : vector<32x128xi32> to vector<32x128xf32>
    %cst_33 = arith.constant 5.96046448E-8 : f32
    %101 = vector.broadcast %cst_33 : f32 to vector<32x128xf32>
    %102 = arith.mulf %100, %101 : vector<32x128xf32>
    %c0_34 = arith.constant 0 : index
    %103 = arith.index_cast %30 : i32 to index
    %c0_35 = arith.constant 0 : index
    %104 = vector.load %arg6[%c0_34, %103, %c0_35] : memref<1x128x128xf32, #tpu.memory_space<vmem>>, vector<1x32x128xf32>
    %105 = vector.shape_cast %104 : vector<1x32x128xf32> to vector<32x128xf32>
    %106 = vector.shape_cast %102 : vector<32x128xf32> to vector<1x32x128xf32>
    tpu.vector_store %arg6[%c0_34, %103, %c0_35], %106 {strides = array<i32>} : memref<1x128x128xf32, #tpu.memory_space<vmem>>, vector<1x32x128xf32>,
    %cst_36 = arith.constant 0.000000e+00 : f32
    %107 = vector.broadcast %cst_36 : f32 to vector<32x128xf32>
    %108 = arith.select %92, %99, %107 : vector<32x128xi1>, vector<32x128xf32>
    %109 = vector.shape_cast %108 : vector<32x128xf32> to vector<1x32x128xf32>
    %cst_37 = arith.constant dense<0.000000e+00> : vector<1xf32>
    %110 = vector.multi_reduction <add>, %109, %cst_37 [1, 2] : vector<1x32x128xf32> to vector<1xf32>
    %111 = vector.shape_cast %110 : vector<1xf32> to vector<1x1x1xf32>
    %112 = vector.extract %111[0, 0, 0] : f32 from vector<1x1x1xf32>
    %113 = arith.addf %cst_16, %112 : f32
    %c1_i32 = arith.constant 1 : i32
    %c32_i32_38 = arith.constant 32 : i32
    %114 = arith.muli %c1_i32, %c32_i32_38 : i32
    %115 = tpu.assume_multiple %114, 32 : i32
    %116 = arith.index_cast %115 : i32 to index
    %c0_39 = arith.constant 0 : index
    %117 = vector.load %arg7[%116, %c0_39] : memref<128x128xf32, #tpu.memory_space<vmem>>, vector<32x128xf32>
    %118 = arith.index_cast %115 : i32 to index
    %c0_40 = arith.constant 0 : index
    %119 = vector.load %arg8[%118, %c0_40] : memref<128x128xi32, #tpu.memory_space<vmem>>, vector<32x128xi32>
    %c0_i32_41 = arith.constant 0 : i32
    %120 = vector.broadcast %c0_i32_41 : i32 to vector<32x128xi32>
    %121 = arith.cmpi ne, %119, %120 : vector<32x128xi32>
    %122 = tpu.iota {dimensions = array<i32: 0>} : vector<32x128xi32>
    %123 = vector.broadcast %115 : i32 to vector<32x128xi32>
    %124 = arith.addi %122, %123 : vector<32x128xi32>
    %125 = tpu.iota {dimensions = array<i32: 1>} : vector<32x128xi32>
    %126 = arith.cmpi ne, %124, %125 : vector<32x128xi32>
    %c-1640531527_i32_42 = arith.constant -1640531527 : i32
    %127 = vector.broadcast %c-1640531527_i32_42 : i32 to vector<32x128xi32>
    %128 = arith.muli %124, %127 : vector<32x128xi32>
    %c-862048943_i32_43 = arith.constant -862048943 : i32
    %129 = vector.broadcast %c-862048943_i32_43 : i32 to vector<32x128xi32>
    %130 = arith.muli %125, %129 : vector<32x128xi32>
    %131 = arith.xori %128, %130 : vector<32x128xi32>
    %132 = vector.broadcast %28 : i32 to vector<32x128xi32>
    %133 = arith.xori %131, %132 : vector<32x128xi32>
    %c16_i32_44 = arith.constant 16 : i32
    %134 = vector.broadcast %c16_i32_44 : i32 to vector<32x128xi32>
    %135 = arith.shrsi %133, %134 : vector<32x128xi32>
    %c65535_i32_45 = arith.constant 65535 : i32
    %136 = vector.broadcast %c65535_i32_45 : i32 to vector<32x128xi32>
    %137 = arith.andi %135, %136 : vector<32x128xi32>
    %138 = arith.xori %133, %137 : vector<32x128xi32>
    %c-2048144789_i32_46 = arith.constant -2048144789 : i32
    %139 = vector.broadcast %c-2048144789_i32_46 : i32 to vector<32x128xi32>
    %140 = arith.muli %138, %139 : vector<32x128xi32>
    %c13_i32_47 = arith.constant 13 : i32
    %141 = vector.broadcast %c13_i32_47 : i32 to vector<32x128xi32>
    %142 = arith.shrsi %140, %141 : vector<32x128xi32>
    %c524287_i32_48 = arith.constant 524287 : i32
    %143 = vector.broadcast %c524287_i32_48 : i32 to vector<32x128xi32>
    %144 = arith.andi %142, %143 : vector<32x128xi32>
    %145 = arith.xori %140, %144 : vector<32x128xi32>
    %c-1028477387_i32_49 = arith.constant -1028477387 : i32
    %146 = vector.broadcast %c-1028477387_i32_49 : i32 to vector<32x128xi32>
    %147 = arith.muli %145, %146 : vector<32x128xi32>
    %c16_i32_50 = arith.constant 16 : i32
    %148 = vector.broadcast %c16_i32_50 : i32 to vector<32x128xi32>
    %149 = arith.shrsi %147, %148 : vector<32x128xi32>
    %c65535_i32_51 = arith.constant 65535 : i32
    %150 = vector.broadcast %c65535_i32_51 : i32 to vector<32x128xi32>
    %151 = arith.andi %149, %150 : vector<32x128xi32>
    %152 = arith.xori %147, %151 : vector<32x128xi32>
    %c16_i32_52 = arith.constant 16 : i32
    %153 = vector.broadcast %c16_i32_52 : i32 to vector<32x128xi32>
    %154 = arith.shrsi %152, %153 : vector<32x128xi32>
    %c65535_i32_53 = arith.constant 65535 : i32
    %155 = vector.broadcast %c65535_i32_53 : i32 to vector<32x128xi32>
    %156 = arith.andi %154, %155 : vector<32x128xi32>
    %157 = arith.xori %152, %156 : vector<32x128xi32>
    %c-2048144789_i32_54 = arith.constant -2048144789 : i32
    %158 = vector.broadcast %c-2048144789_i32_54 : i32 to vector<32x128xi32>
    %159 = arith.muli %157, %158 : vector<32x128xi32>
    %c13_i32_55 = arith.constant 13 : i32
    %160 = vector.broadcast %c13_i32_55 : i32 to vector<32x128xi32>
    %161 = arith.shrsi %159, %160 : vector<32x128xi32>
    %c524287_i32_56 = arith.constant 524287 : i32
    %162 = vector.broadcast %c524287_i32_56 : i32 to vector<32x128xi32>
    %163 = arith.andi %161, %162 : vector<32x128xi32>
    %164 = arith.xori %159, %163 : vector<32x128xi32>
    %c-1028477387_i32_57 = arith.constant -1028477387 : i32
    %165 = vector.broadcast %c-1028477387_i32_57 : i32 to vector<32x128xi32>
    %166 = arith.muli %164, %165 : vector<32x128xi32>
    %c16_i32_58 = arith.constant 16 : i32
    %167 = vector.broadcast %c16_i32_58 : i32 to vector<32x128xi32>
    %168 = arith.shrsi %166, %167 : vector<32x128xi32>
    %c65535_i32_59 = arith.constant 65535 : i32
    %169 = vector.broadcast %c65535_i32_59 : i32 to vector<32x128xi32>
    %170 = arith.andi %168, %169 : vector<32x128xi32>
    %171 = arith.xori %166, %170 : vector<32x128xi32>
    %c16777215_i32_60 = arith.constant 16777215 : i32
    %172 = vector.broadcast %c16777215_i32_60 : i32 to vector<32x128xi32>
    %173 = arith.andi %171, %172 : vector<32x128xi32>
    %174 = vector.broadcast %25 : i32 to vector<32x128xi32>
    %175 = arith.cmpi sgt, %173, %174 : vector<32x128xi32>
    %176 = arith.ori %121, %175 : vector<32x128xi1>
    %177 = arith.andi %176, %126 : vector<32x128xi1>
    %cst_61 = arith.constant 1.000000e+00 : f32
    %178 = vector.broadcast %cst_61 : f32 to vector<32x128xf32>
    %179 = arith.subf %178, %117 : vector<32x128xf32>
    %cst_62 = arith.constant 5.000000e-01 : f32
    %180 = vector.broadcast %cst_62 : f32 to vector<32x128xf32>
    %181 = arith.subf %117, %180 : vector<32x128xf32>
    %cst_63 = arith.constant 0.000000e+00 : f32
    %182 = vector.broadcast %cst_63 : f32 to vector<32x128xf32>
    %183 = arith.maximumf %181, %182 : vector<32x128xf32>
    %184 = arith.select %121, %179, %183 : vector<32x128xi1>, vector<32x128xf32>
    %185 = arith.sitofp %173 : vector<32x128xi32> to vector<32x128xf32>
    %cst_64 = arith.constant 5.96046448E-8 : f32
    %186 = vector.broadcast %cst_64 : f32 to vector<32x128xf32>
    %187 = arith.mulf %185, %186 : vector<32x128xf32>
    %c0_65 = arith.constant 0 : index
    %188 = arith.index_cast %115 : i32 to index
    %c0_66 = arith.constant 0 : index
    %189 = vector.load %arg6[%c0_65, %188, %c0_66] : memref<1x128x128xf32, #tpu.memory_space<vmem>>, vector<1x32x128xf32>
    %190 = vector.shape_cast %189 : vector<1x32x128xf32> to vector<32x128xf32>
    %191 = vector.shape_cast %187 : vector<32x128xf32> to vector<1x32x128xf32>
    tpu.vector_store %arg6[%c0_65, %188, %c0_66], %191 {strides = array<i32>} : memref<1x128x128xf32, #tpu.memory_space<vmem>>, vector<1x32x128xf32>,
    %cst_67 = arith.constant 0.000000e+00 : f32
    %192 = vector.broadcast %cst_67 : f32 to vector<32x128xf32>
    %193 = arith.select %177, %184, %192 : vector<32x128xi1>, vector<32x128xf32>
    %194 = vector.shape_cast %193 : vector<32x128xf32> to vector<1x32x128xf32>
    %cst_68 = arith.constant dense<0.000000e+00> : vector<1xf32>
    %195 = vector.multi_reduction <add>, %194, %cst_68 [1, 2] : vector<1x32x128xf32> to vector<1xf32>
    %196 = vector.shape_cast %195 : vector<1xf32> to vector<1x1x1xf32>
    %197 = vector.extract %196[0, 0, 0] : f32 from vector<1x1x1xf32>
    %198 = arith.addf %113, %197 : f32
    %c2_i32 = arith.constant 2 : i32
    %c32_i32_69 = arith.constant 32 : i32
    %199 = arith.muli %c2_i32, %c32_i32_69 : i32
    %200 = tpu.assume_multiple %199, 32 : i32
    %201 = arith.index_cast %200 : i32 to index
    %c0_70 = arith.constant 0 : index
    %202 = vector.load %arg7[%201, %c0_70] : memref<128x128xf32, #tpu.memory_space<vmem>>, vector<32x128xf32>
    %203 = arith.index_cast %200 : i32 to index
    %c0_71 = arith.constant 0 : index
    %204 = vector.load %arg8[%203, %c0_71] : memref<128x128xi32, #tpu.memory_space<vmem>>, vector<32x128xi32>
    %c0_i32_72 = arith.constant 0 : i32
    %205 = vector.broadcast %c0_i32_72 : i32 to vector<32x128xi32>
    %206 = arith.cmpi ne, %204, %205 : vector<32x128xi32>
    %207 = tpu.iota {dimensions = array<i32: 0>} : vector<32x128xi32>
    %208 = vector.broadcast %200 : i32 to vector<32x128xi32>
    %209 = arith.addi %207, %208 : vector<32x128xi32>
    %210 = tpu.iota {dimensions = array<i32: 1>} : vector<32x128xi32>
    %211 = arith.cmpi ne, %209, %210 : vector<32x128xi32>
    %c-1640531527_i32_73 = arith.constant -1640531527 : i32
    %212 = vector.broadcast %c-1640531527_i32_73 : i32 to vector<32x128xi32>
    %213 = arith.muli %209, %212 : vector<32x128xi32>
    %c-862048943_i32_74 = arith.constant -862048943 : i32
    %214 = vector.broadcast %c-862048943_i32_74 : i32 to vector<32x128xi32>
    %215 = arith.muli %210, %214 : vector<32x128xi32>
    %216 = arith.xori %213, %215 : vector<32x128xi32>
    %217 = vector.broadcast %28 : i32 to vector<32x128xi32>
    %218 = arith.xori %216, %217 : vector<32x128xi32>
    %c16_i32_75 = arith.constant 16 : i32
    %219 = vector.broadcast %c16_i32_75 : i32 to vector<32x128xi32>
    %220 = arith.shrsi %218, %219 : vector<32x128xi32>
    %c65535_i32_76 = arith.constant 65535 : i32
    %221 = vector.broadcast %c65535_i32_76 : i32 to vector<32x128xi32>
    %222 = arith.andi %220, %221 : vector<32x128xi32>
    %223 = arith.xori %218, %222 : vector<32x128xi32>
    %c-2048144789_i32_77 = arith.constant -2048144789 : i32
    %224 = vector.broadcast %c-2048144789_i32_77 : i32 to vector<32x128xi32>
    %225 = arith.muli %223, %224 : vector<32x128xi32>
    %c13_i32_78 = arith.constant 13 : i32
    %226 = vector.broadcast %c13_i32_78 : i32 to vector<32x128xi32>
    %227 = arith.shrsi %225, %226 : vector<32x128xi32>
    %c524287_i32_79 = arith.constant 524287 : i32
    %228 = vector.broadcast %c524287_i32_79 : i32 to vector<32x128xi32>
    %229 = arith.andi %227, %228 : vector<32x128xi32>
    %230 = arith.xori %225, %229 : vector<32x128xi32>
    %c-1028477387_i32_80 = arith.constant -1028477387 : i32
    %231 = vector.broadcast %c-1028477387_i32_80 : i32 to vector<32x128xi32>
    %232 = arith.muli %230, %231 : vector<32x128xi32>
    %c16_i32_81 = arith.constant 16 : i32
    %233 = vector.broadcast %c16_i32_81 : i32 to vector<32x128xi32>
    %234 = arith.shrsi %232, %233 : vector<32x128xi32>
    %c65535_i32_82 = arith.constant 65535 : i32
    %235 = vector.broadcast %c65535_i32_82 : i32 to vector<32x128xi32>
    %236 = arith.andi %234, %235 : vector<32x128xi32>
    %237 = arith.xori %232, %236 : vector<32x128xi32>
    %c16_i32_83 = arith.constant 16 : i32
    %238 = vector.broadcast %c16_i32_83 : i32 to vector<32x128xi32>
    %239 = arith.shrsi %237, %238 : vector<32x128xi32>
    %c65535_i32_84 = arith.constant 65535 : i32
    %240 = vector.broadcast %c65535_i32_84 : i32 to vector<32x128xi32>
    %241 = arith.andi %239, %240 : vector<32x128xi32>
    %242 = arith.xori %237, %241 : vector<32x128xi32>
    %c-2048144789_i32_85 = arith.constant -2048144789 : i32
    %243 = vector.broadcast %c-2048144789_i32_85 : i32 to vector<32x128xi32>
    %244 = arith.muli %242, %243 : vector<32x128xi32>
    %c13_i32_86 = arith.constant 13 : i32
    %245 = vector.broadcast %c13_i32_86 : i32 to vector<32x128xi32>
    %246 = arith.shrsi %244, %245 : vector<32x128xi32>
    %c524287_i32_87 = arith.constant 524287 : i32
    %247 = vector.broadcast %c524287_i32_87 : i32 to vector<32x128xi32>
    %248 = arith.andi %246, %247 : vector<32x128xi32>
    %249 = arith.xori %244, %248 : vector<32x128xi32>
    %c-1028477387_i32_88 = arith.constant -1028477387 : i32
    %250 = vector.broadcast %c-1028477387_i32_88 : i32 to vector<32x128xi32>
    %251 = arith.muli %249, %250 : vector<32x128xi32>
    %c16_i32_89 = arith.constant 16 : i32
    %252 = vector.broadcast %c16_i32_89 : i32 to vector<32x128xi32>
    %253 = arith.shrsi %251, %252 : vector<32x128xi32>
    %c65535_i32_90 = arith.constant 65535 : i32
    %254 = vector.broadcast %c65535_i32_90 : i32 to vector<32x128xi32>
    %255 = arith.andi %253, %254 : vector<32x128xi32>
    %256 = arith.xori %251, %255 : vector<32x128xi32>
    %c16777215_i32_91 = arith.constant 16777215 : i32
    %257 = vector.broadcast %c16777215_i32_91 : i32 to vector<32x128xi32>
    %258 = arith.andi %256, %257 : vector<32x128xi32>
    %259 = vector.broadcast %25 : i32 to vector<32x128xi32>
    %260 = arith.cmpi sgt, %258, %259 : vector<32x128xi32>
    %261 = arith.ori %206, %260 : vector<32x128xi1>
    %262 = arith.andi %261, %211 : vector<32x128xi1>
    %cst_92 = arith.constant 1.000000e+00 : f32
    %263 = vector.broadcast %cst_92 : f32 to vector<32x128xf32>
    %264 = arith.subf %263, %202 : vector<32x128xf32>
    %cst_93 = arith.constant 5.000000e-01 : f32
    %265 = vector.broadcast %cst_93 : f32 to vector<32x128xf32>
    %266 = arith.subf %202, %265 : vector<32x128xf32>
    %cst_94 = arith.constant 0.000000e+00 : f32
    %267 = vector.broadcast %cst_94 : f32 to vector<32x128xf32>
    %268 = arith.maximumf %266, %267 : vector<32x128xf32>
    %269 = arith.select %206, %264, %268 : vector<32x128xi1>, vector<32x128xf32>
    %270 = arith.sitofp %258 : vector<32x128xi32> to vector<32x128xf32>
    %cst_95 = arith.constant 5.96046448E-8 : f32
    %271 = vector.broadcast %cst_95 : f32 to vector<32x128xf32>
    %272 = arith.mulf %270, %271 : vector<32x128xf32>
    %c0_96 = arith.constant 0 : index
    %273 = arith.index_cast %200 : i32 to index
    %c0_97 = arith.constant 0 : index
    %274 = vector.load %arg6[%c0_96, %273, %c0_97] : memref<1x128x128xf32, #tpu.memory_space<vmem>>, vector<1x32x128xf32>
    %275 = vector.shape_cast %274 : vector<1x32x128xf32> to vector<32x128xf32>
    %276 = vector.shape_cast %272 : vector<32x128xf32> to vector<1x32x128xf32>
    tpu.vector_store %arg6[%c0_96, %273, %c0_97], %276 {strides = array<i32>} : memref<1x128x128xf32, #tpu.memory_space<vmem>>, vector<1x32x128xf32>,
    %cst_98 = arith.constant 0.000000e+00 : f32
    %277 = vector.broadcast %cst_98 : f32 to vector<32x128xf32>
    %278 = arith.select %262, %269, %277 : vector<32x128xi1>, vector<32x128xf32>
    %279 = vector.shape_cast %278 : vector<32x128xf32> to vector<1x32x128xf32>
    %cst_99 = arith.constant dense<0.000000e+00> : vector<1xf32>
    %280 = vector.multi_reduction <add>, %279, %cst_99 [1, 2] : vector<1x32x128xf32> to vector<1xf32>
    %281 = vector.shape_cast %280 : vector<1xf32> to vector<1x1x1xf32>
    %282 = vector.extract %281[0, 0, 0] : f32 from vector<1x1x1xf32>
    %283 = arith.addf %198, %282 : f32
    %c3_i32 = arith.constant 3 : i32
    %c32_i32_100 = arith.constant 32 : i32
    %284 = arith.muli %c3_i32, %c32_i32_100 : i32
    %285 = tpu.assume_multiple %284, 32 : i32
    %286 = arith.index_cast %285 : i32 to index
    %c0_101 = arith.constant 0 : index
    %287 = vector.load %arg7[%286, %c0_101] : memref<128x128xf32, #tpu.memory_space<vmem>>, vector<32x128xf32>
    %288 = arith.index_cast %285 : i32 to index
    %c0_102 = arith.constant 0 : index
    %289 = vector.load %arg8[%288, %c0_102] : memref<128x128xi32, #tpu.memory_space<vmem>>, vector<32x128xi32>
    %c0_i32_103 = arith.constant 0 : i32
    %290 = vector.broadcast %c0_i32_103 : i32 to vector<32x128xi32>
    %291 = arith.cmpi ne, %289, %290 : vector<32x128xi32>
    %292 = tpu.iota {dimensions = array<i32: 0>} : vector<32x128xi32>
    %293 = vector.broadcast %285 : i32 to vector<32x128xi32>
    %294 = arith.addi %292, %293 : vector<32x128xi32>
    %295 = tpu.iota {dimensions = array<i32: 1>} : vector<32x128xi32>
    %296 = arith.cmpi ne, %294, %295 : vector<32x128xi32>
    %c-1640531527_i32_104 = arith.constant -1640531527 : i32
    %297 = vector.broadcast %c-1640531527_i32_104 : i32 to vector<32x128xi32>
    %298 = arith.muli %294, %297 : vector<32x128xi32>
    %c-862048943_i32_105 = arith.constant -862048943 : i32
    %299 = vector.broadcast %c-862048943_i32_105 : i32 to vector<32x128xi32>
    %300 = arith.muli %295, %299 : vector<32x128xi32>
    %301 = arith.xori %298, %300 : vector<32x128xi32>
    %302 = vector.broadcast %28 : i32 to vector<32x128xi32>
    %303 = arith.xori %301, %302 : vector<32x128xi32>
    %c16_i32_106 = arith.constant 16 : i32
    %304 = vector.broadcast %c16_i32_106 : i32 to vector<32x128xi32>
    %305 = arith.shrsi %303, %304 : vector<32x128xi32>
    %c65535_i32_107 = arith.constant 65535 : i32
    %306 = vector.broadcast %c65535_i32_107 : i32 to vector<32x128xi32>
    %307 = arith.andi %305, %306 : vector<32x128xi32>
    %308 = arith.xori %303, %307 : vector<32x128xi32>
    %c-2048144789_i32_108 = arith.constant -2048144789 : i32
    %309 = vector.broadcast %c-2048144789_i32_108 : i32 to vector<32x128xi32>
    %310 = arith.muli %308, %309 : vector<32x128xi32>
    %c13_i32_109 = arith.constant 13 : i32
    %311 = vector.broadcast %c13_i32_109 : i32 to vector<32x128xi32>
    %312 = arith.shrsi %310, %311 : vector<32x128xi32>
    %c524287_i32_110 = arith.constant 524287 : i32
    %313 = vector.broadcast %c524287_i32_110 : i32 to vector<32x128xi32>
    %314 = arith.andi %312, %313 : vector<32x128xi32>
    %315 = arith.xori %310, %314 : vector<32x128xi32>
    %c-1028477387_i32_111 = arith.constant -1028477387 : i32
    %316 = vector.broadcast %c-1028477387_i32_111 : i32 to vector<32x128xi32>
    %317 = arith.muli %315, %316 : vector<32x128xi32>
    %c16_i32_112 = arith.constant 16 : i32
    %318 = vector.broadcast %c16_i32_112 : i32 to vector<32x128xi32>
    %319 = arith.shrsi %317, %318 : vector<32x128xi32>
    %c65535_i32_113 = arith.constant 65535 : i32
    %320 = vector.broadcast %c65535_i32_113 : i32 to vector<32x128xi32>
    %321 = arith.andi %319, %320 : vector<32x128xi32>
    %322 = arith.xori %317, %321 : vector<32x128xi32>
    %c16_i32_114 = arith.constant 16 : i32
    %323 = vector.broadcast %c16_i32_114 : i32 to vector<32x128xi32>
    %324 = arith.shrsi %322, %323 : vector<32x128xi32>
    %c65535_i32_115 = arith.constant 65535 : i32
    %325 = vector.broadcast %c65535_i32_115 : i32 to vector<32x128xi32>
    %326 = arith.andi %324, %325 : vector<32x128xi32>
    %327 = arith.xori %322, %326 : vector<32x128xi32>
    %c-2048144789_i32_116 = arith.constant -2048144789 : i32
    %328 = vector.broadcast %c-2048144789_i32_116 : i32 to vector<32x128xi32>
    %329 = arith.muli %327, %328 : vector<32x128xi32>
    %c13_i32_117 = arith.constant 13 : i32
    %330 = vector.broadcast %c13_i32_117 : i32 to vector<32x128xi32>
    %331 = arith.shrsi %329, %330 : vector<32x128xi32>
    %c524287_i32_118 = arith.constant 524287 : i32
    %332 = vector.broadcast %c524287_i32_118 : i32 to vector<32x128xi32>
    %333 = arith.andi %331, %332 : vector<32x128xi32>
    %334 = arith.xori %329, %333 : vector<32x128xi32>
    %c-1028477387_i32_119 = arith.constant -1028477387 : i32
    %335 = vector.broadcast %c-1028477387_i32_119 : i32 to vector<32x128xi32>
    %336 = arith.muli %334, %335 : vector<32x128xi32>
    %c16_i32_120 = arith.constant 16 : i32
    %337 = vector.broadcast %c16_i32_120 : i32 to vector<32x128xi32>
    %338 = arith.shrsi %336, %337 : vector<32x128xi32>
    %c65535_i32_121 = arith.constant 65535 : i32
    %339 = vector.broadcast %c65535_i32_121 : i32 to vector<32x128xi32>
    %340 = arith.andi %338, %339 : vector<32x128xi32>
    %341 = arith.xori %336, %340 : vector<32x128xi32>
    %c16777215_i32_122 = arith.constant 16777215 : i32
    %342 = vector.broadcast %c16777215_i32_122 : i32 to vector<32x128xi32>
    %343 = arith.andi %341, %342 : vector<32x128xi32>
    %344 = vector.broadcast %25 : i32 to vector<32x128xi32>
    %345 = arith.cmpi sgt, %343, %344 : vector<32x128xi32>
    %346 = arith.ori %291, %345 : vector<32x128xi1>
    %347 = arith.andi %346, %296 : vector<32x128xi1>
    %cst_123 = arith.constant 1.000000e+00 : f32
    %348 = vector.broadcast %cst_123 : f32 to vector<32x128xf32>
    %349 = arith.subf %348, %287 : vector<32x128xf32>
    %cst_124 = arith.constant 5.000000e-01 : f32
    %350 = vector.broadcast %cst_124 : f32 to vector<32x128xf32>
    %351 = arith.subf %287, %350 : vector<32x128xf32>
    %cst_125 = arith.constant 0.000000e+00 : f32
    %352 = vector.broadcast %cst_125 : f32 to vector<32x128xf32>
    %353 = arith.maximumf %351, %352 : vector<32x128xf32>
    %354 = arith.select %291, %349, %353 : vector<32x128xi1>, vector<32x128xf32>
    %355 = arith.sitofp %343 : vector<32x128xi32> to vector<32x128xf32>
    %cst_126 = arith.constant 5.96046448E-8 : f32
    %356 = vector.broadcast %cst_126 : f32 to vector<32x128xf32>
    %357 = arith.mulf %355, %356 : vector<32x128xf32>
    %c0_127 = arith.constant 0 : index
    %358 = arith.index_cast %285 : i32 to index
    %c0_128 = arith.constant 0 : index
    %359 = vector.load %arg6[%c0_127, %358, %c0_128] : memref<1x128x128xf32, #tpu.memory_space<vmem>>, vector<1x32x128xf32>
    %360 = vector.shape_cast %359 : vector<1x32x128xf32> to vector<32x128xf32>
    %361 = vector.shape_cast %357 : vector<32x128xf32> to vector<1x32x128xf32>
    tpu.vector_store %arg6[%c0_127, %358, %c0_128], %361 {strides = array<i32>} : memref<1x128x128xf32, #tpu.memory_space<vmem>>, vector<1x32x128xf32>,
    %cst_129 = arith.constant 0.000000e+00 : f32
    %362 = vector.broadcast %cst_129 : f32 to vector<32x128xf32>
    %363 = arith.select %347, %354, %362 : vector<32x128xi1>, vector<32x128xf32>
    %364 = vector.shape_cast %363 : vector<32x128xf32> to vector<1x32x128xf32>
    %cst_130 = arith.constant dense<0.000000e+00> : vector<1xf32>
    %365 = vector.multi_reduction <add>, %364, %cst_130 [1, 2] : vector<1x32x128xf32> to vector<1xf32>
    %366 = vector.shape_cast %365 : vector<1xf32> to vector<1x1x1xf32>
    %367 = vector.extract %366[0, 0, 0] : f32 from vector<1x1x1xf32>
    %368 = arith.addf %283, %367 : f32
    %c4_i32 = arith.constant 4 : i32
    %369 = vector.broadcast %368 : f32 to vector<1x1x128xf32>
    %c0_131 = arith.constant 0 : index
    %c0_132 = arith.constant 0 : index
    %c0_133 = arith.constant 0 : index
    %370 = vector.load %arg5[%c0_131, %c0_132, %c0_133] : memref<1x1x128xf32, #tpu.memory_space<vmem>>, vector<1x1x128xf32>
    tpu.vector_store %arg5[%c0_131, %c0_132, %c0_133], %369 {strides = array<i32>} : memref<1x1x128xf32, #tpu.memory_space<vmem>>, vector<1x1x128xf32>,
    return
  }
  func.func @transform_0(%arg0: i32) -> (i32, i32) {
    %c0_i32 = arith.constant 0 : i32
    %c0_i32_0 = arith.constant 0 : i32
    %c0_i32_1 = arith.constant 0 : i32
    return %c0_i32, %c0_i32_0 : i32, i32
  }
  func.func @transform_1(%arg0: i32) -> i32 {
    %c0_i32 = arith.constant 0 : i32
    %c0_i32_0 = arith.constant 0 : i32
    return %c0_i32 : i32
  }
  func.func @transform_2(%arg0: i32) -> (i32, i32, i32) {
    %c0_i32 = arith.constant 0 : i32
    %c0_i32_0 = arith.constant 0 : i32
    %c0_i32_1 = arith.constant 0 : i32
    return %arg0, %c0_i32, %c0_i32_0 : i32, i32, i32
  }
  func.func @transform_3(%arg0: i32) -> (i32, i32, i32) {
    %c0_i32 = arith.constant 0 : i32
    %c0_i32_0 = arith.constant 0 : i32
    %c0_i32_1 = arith.constant 0 : i32
    return %arg0, %c0_i32, %c0_i32_0 : i32, i32, i32
  }
  func.func @transform_4(%arg0: i32) -> (i32, i32, i32) {
    %c0_i32 = arith.constant 0 : i32
    %c0_i32_0 = arith.constant 0 : i32
    %c0_i32_1 = arith.constant 0 : i32
    return %arg0, %c0_i32, %c0_i32_0 : i32, i32, i32
  }
  func.func @transform_5(%arg0: i32) -> (i32, i32, i32) {
    %c0_i32 = arith.constant 0 : i32
    %c0_i32_0 = arith.constant 0 : i32
    %c0_i32_1 = arith.constant 0 : i32
    return %arg0, %c0_i32, %c0_i32_0 : i32, i32, i32
  }
}

</mosaic_0001>

<bundles_post_ra>
// kernel: selfsup_loss.1
= control target key start
LH: loop header
LB: loop body
LE: loop exit
PB: predicated region body
PF: predicated region fallthrough
CT: control target
= control target key end

     0   :  { %s2527_s0 = inlined_call_operand.<no memory space> [shape: f32[1,1], index: 0, kind: input, shape index: {}]   ;;  %s2528_s1 = inlined_call_operand.<no memory space> [shape: s32[1], index: 1, kind: input, shape index: {}]   ;;  %s2529_s2 = inlined_call_operand.hbm [shape: f32[2,32,128], index: 2, kind: input, shape index: {}]   ;;  %s2530_s3 = inlined_call_operand.vmem [shape: s32[2,1,128], index: 3, kind: input, shape index: {}]   ;;  %s2531_s4 = inlined_call_operand.vmem [shape: f32[2,1,128], index: 4, kind: output, shape index: {0}]   ;;  %s2532_s5 = inlined_call_operand.hbm [shape: f32[2,128,128], index: 5, kind: output, shape index: {1}]  }
   0x1   :  { %11 = sst [smem:[#allocation4]] %s2527_s0 }
   0x2   :  { %12 = sst [smem:[#allocation5]] %s2528_s1 }
   0x3   :  { %13 = vsyncpa [#allocation7], 0 }
   0x4   :  { %15 = vsyncpa [#allocation7 + $0x1], 0 }
   0x5   :  { %16 = vsyncpa [#allocation8], 0 }
   0x6   :  { %18 = vsyncpa [#allocation8 + $0x1], 0  ;;  %s1807_s22 = smov 0   ;;  %s1809_s23 = smov 0  }
   0x7   :  { %s1811_s24 = smov 0   ;;  %s1813_s25 = smov 0  }
   0x8 LB: > { %s1828_s0 = sadd.s32 4294967295, %s1763_s25   ;;  %s1418_s1 = sadd.s32 4294967294, %s1763_s25   ;;  %s1763_s25 = sphi %s1813_s25, %s2632_s25   ;;  %s1759_s24 = sphi %s1811_s24, %s2631_s24   ;;  %s1755_s23 = sphi %s1809_s23, %s2630_s23   ;;  %s1751_s22 = sphi %s1807_s22, %s2629_s22  }
   0x9   : > { %s1832_s26 = sadd.s32 1, %s1763_s25   ;;  %s73_s27 = sadd.s32 1, %s1759_s24 }
   0xa   : > { %s70_s28 = ssub.s32 %s1763_s25, %s1832_s26  ;;  %p80_p0 = scmp.ne.s32.totalorder %s1759_s24, %s1755_s23 }
   0xb   : > { %p71_p1 = scmp.eq.s32.totalorder %s70_s28, 0  ;;  %p81_p2 = scmp.eq.s32.totalorder %s1763_s25, 0 }
   0xc   : > { %p86_p3 = scmp.ne.s32.totalorder %s1755_s23, %s1751_s22  ;;  %p87_p4 = scmp.eq.s32.totalorder %s1828_s0, 0 }
   0xd   : > { %s1844_s29 = scalar_select %p71_p1, %s1759_s24, %s73_s27  }
   0xe   : > { %p1846_p5 = por %p81_p2, %p80_p0  ;;  %p1850_p6 = por %p87_p4, %p86_p3 }
   0xf   : > { %p162_p7 = scmp.eq.s32.totalorder %s1828_s0, 1  ;;  %p168_p8 = scmp.eq.s32.totalorder %s1418_s1, 1 }
  0x10   : > { %p1623_p10 = scmp.lt.s32.totalorder %s1763_s25, 2  ;;  %s194_s9 = sand.u32 1, %s1759_s24  }
  0x11   : > { %p1857_p11 = por %p162_p7, %p80_p0  ;;  %p1861_p12 = por %p168_p8, %p86_p3 }
  0x12   : > { %s1565_s10 = sshll.u32 %s1763_s25, 9  ;;  %s1421_s11 = sshll.u32 %s194_s9, 5 }
  0x13   : > { %s2553_s7 = scalar_select %p1857_p11, 1, 0 }
  0x14   : > { %s2554_s8 = scalar_select %p1861_p12, 1, 0 }
  0x15   : > { %s1870_s14 = scalar_lea.hbm %s2529_s2, %s1565_s10  ;;  %s198_s15 = scalar_lea.vmem [#allocation6], %s1421_s11 }
  0x16   : > { %s205_s16 = sshll.u32 %s198_s15, 4  ;;  %p1874_p13 = pnand %p1623_p10, %p1846_p5  ;;  %s1878_s16 = int_to_ptr.vmem [resolvable:$true] %s205_s16 }
  0x17   : > { %s1880_s18 = scalar_lea.sflag [#allocation7], %s194_s9  ;;  %s1667_s19 = scalar_lea.hbm %s1870_s14, 512 }
  0x18   : > { %p1668_p0 = scmp.ne.s32.totalorder %s1870_s14, %s1667_s19  ;;  %p1669_p1 = pneg %p1874_p13 }
  0x19   : > { %s1672_s1 = scalar_lea.hbm %s2529_s2, 1024  ;;  %p1673_p4 = scmp.lt.u32.totalorder %s1870_s14, %s2529_s2 }
  0x1a   : > { %p1670_p2 = pnand %p1669_p1, %p1668_p0  ;;  %p1674_p5 = scmp.lt.u32.totalorder %s1672_s1, %s1667_s19 }
  0x1b   : > { %p1676_p8 = scmp.lt.u32.totalorder %s1667_s19, %s1870_s14 }
  0x1c   : > { %p1671_p3 = pneg %p1670_p2  ;;  %p1675_p7 = por %p1674_p5, %p1673_p4 }
  0x1e   : > { %p1677_p10 = por %p1676_p8, %p1675_p7 }
  0x20   : > { %p1678_p9 = pnand %p1677_p10, %p1671_p3 }
  0x22   : > { %1681 = shalt.err (!%p1678_p9)
}
  0x23   : > { %s1682_s30 = scalar_lea.vmem %s1878_s16, 512  ;;  %s1765_s9 = smov [#allocation6]  }
  0x24   : > { %p1683_p0 = scmp.ne.s32.totalorder %s1878_s16, %s1682_s30  ;;  %s1687_s10 = sshll.u32 %s1765_s9, 4  ;;  %s1688_s10 = int_to_ptr.vmem [resolvable:$false] %s1687_s10 }
  0x25   : > { %s1689_s11 = scalar_lea.vmem %s1688_s10, 1024  ;;  %p1690_p11 = scmp.lt.s32.totalorder %s1878_s16, %s1688_s10 }
  0x26   : > { %p1685_p2 = pnand %p1683_p0, %p1669_p1  ;;  %p1691_p4 = scmp.lt.s32.totalorder %s1689_s11, %s1682_s30 }
  0x28   : > { %p1686_p12 = pneg %p1685_p2  ;;  %p1692_p5 = por %p1691_p4, %p1690_p11 }
  0x2a   : > { %p1693_p7 = pnand %p1692_p5, %p1686_p12 }
  0x2c   : > { %1696 = shalt.err (!%p1693_p7)
}
  0x2d   : > { %s1766_s12 = smov 128   ;;  %s1767_s13 = smov 8  }
  0x2e   : > { %1618 = dma.hbm_to_vmem [thread:$0]  (!%p1874_p13), %s1870_s14, 512, %s1878_s16, %s1880_s18, %s1766_s12, %s1766_s12, %s1767_s13  }
  0x2f   : > { %p1424_p9 = scmp.ge.s32.totalorder %s1763_s25, 1  ;;  %p219_p1 = scmp.lt.s32.totalorder %s1763_s25, 3 }
  0x31   : > { %p220_p3 = pnand %p1424_p9, %p219_p1 }
  0x32   : > { %s1911_s15 = sand.u32 (!%p220_p3), 1, %s1755_s23  }
  0x33   : > { %223 = sbr.rel (%p220_p3) target bundleno = 678 (0x2a6), region = 36  ;;  %s1425_s19 = sshll.u32 (!%p220_p3), %s1911_s15, 5 }
  0x34   : > { %s226_s20 = scalar_lea.sflag (!%p220_p3), [#allocation7], %s1911_s15  ;;  %s229_s21 = scalar_lea.vmem (!%p220_p3), [#allocation6], %s1425_s19 }
  0x3a   : > { %1742 = dma.done.wait (%p1850_p6), %s226_s20, 512  }
  0x3b   : > { %1744 = vsyncadd (%p1850_p6), %s226_s20, 4294966784  ;;  %v269_v0 = vld [vmem:[%s229_s21] sm:$0xff]  ;;  %v270_v1 = vld [vmem:[%s229_s21 + $0x8] sm:$0xff]  ;;  %p262_p6 = scmp.lt.s32.totalorder %s1828_s0, 1  ;;  %v560_v30 = vlaneseq  ;;  %s545_s14 = sld [smem:[#allocation5]]  ;;  %vm317_vm2 = vcmask 261120  }
  0x3c   : > { %v271_v2 = vld [vmem:[%s229_s21 + $0x10] sm:$0xff]  ;;  %v272_v3 = vld [vmem:[%s229_s21 + $0x18] sm:$0xff]  ;;  %v273_v4 = vmul.f32 %v269_v0, %v269_v0  ;;  %v274_v5 = vmul.f32 %v270_v1, %v270_v1  ;;  %s546_s1 = smul.u32 1000003, %s1828_s0  ;;  %s1426_s28 = sshll.u32 %s1911_s15, 7 }
  0x3d   : > { %v275_v6 = vmul.f32 %v271_v2, %v271_v2  ;;  %v276_v7 = vmul.f32 %v272_v3, %v272_v3  ;;  %s1921_s6 = scalar_select %p262_p6, %s1828_s0, 1  ;;  %v1923_v31 = vshrl.u32 %v560_v30, 7  ;;  %v1925_v32 = vand.u32 127, %v560_v30 }
  0x3e   : > { %v277_v8 = vadd.f32 %v274_v5, %v273_v4  ;;  %s2008_s30 = scalar_lea.vmem [#allocation9], %s1426_s28  ;;  %s540_s9 = sld [smem:[#allocation4]] }
  0x3f   : > { %s1931_s18 = scalar_lea.vmem %s2530_s3, %s1921_s6  ;;  %v576_v33 = vmul.u32 2654435769, %v1923_v31  ;;  %v1935_v34 = vmul.u32 3432918353, %v1925_v32  ;;  %v1944_v37 = vadd.s32 8, %v1923_v31  ;;  %v1953_v43 = vadd.s32 16, %v1923_v31 }
  0x40   : > { %v278_v9 = vadd.f32 %v277_v8, %v275_v6  ;;  %v1938_v35 = vld [vmem:[%s1931_s18] ss:$0 sm:$0xff]  ;;  %v1960_v50 = vadd.s32 24, %v1923_v31  ;;  %v1966_v58 = vadd.s32 32, %v1923_v31  ;;  %s1566_s19 = sshll.u32 %s1828_s0, 11  ;;  %s1317_s20 = sshll.u32 %s2008_s30, 4  ;;  %s2479_s20 = int_to_ptr.vmem [resolvable:$true] %s1317_s20 }
  0x41   : > { %460 = vxpose.xlu1.b32.start [1/16] %v1938_v35, 128  ;;  %v581_v36 = vxor.u32 %v1935_v34, %v576_v33  ;;  %s547_s27 = sadd.s32 %s546_s1, %s545_s14  ;;  %v577_v40 = vmul.u32 2654435769, %v1944_v37  ;;  %v578_v46 = vmul.u32 2654435769, %v1953_v43  ;;  %v1973_v4 = vadd.s32 32, %v1944_v37  ;;  %s2477_s16 = scalar_lea.hbm %s2532_s5, %s1566_s19 }
  0x42   : > { %v279_v10 = vadd.f32 %v278_v9, %v276_v7  ;;  %v1947_v38 = vstv %s547_s27  ;;  %v579_v54 = vmul.u32 2654435769, %v1960_v50  ;;  %v1987_v30 = vadd.s32 32, %v1960_v50  ;;  %s1301_s17 = scalar_lea.sflag [#allocation8], %s1911_s15  ;;  %p2626_p12 = scmp.ne.s32.totalorder %s2553_s7, 0 }
  0x43   : > { %v586_v39 = vxor.u32 %v1947_v38, %v581_v36  ;;  %v582_v42 = vxor.u32 %v1935_v34, %v577_v40  ;;  %v583_v49 = vxor.u32 %v1935_v34, %v578_v46  ;;  %vm759_vm4 = vcmp.ne.s32.totalorder %v1966_v58, %v1925_v32  ;;  %s1768_s1 = smov [#allocation9]  }
  0x44   : > { %v280_v11 = vrot.slane %v279_v10, 4  ;;  %v584_v59 = vxor.u32 %v1935_v34, %v579_v54  ;;  %s541_s10 = ssub.f32 1.0, %s540_s9  ;;  %vm760_vm9 = vcmp.ne.s32.totalorder %v1973_v4, %v1925_v32  ;;  %s1701_s27 = sshll.u32 %s1768_s1, 4  ;;  %s1702_s27 = int_to_ptr.vmem [resolvable:$false] %s1701_s27 }
  0x45   : > { %461 = vxpose.xlu1.b32.cont [2/16] %v1938_v35, 128  ;;  %v1436_v41 = vshrl.u32 %v586_v39, 16  ;;  %v587_v45 = vxor.u32 %v1947_v38, %v582_v42  ;;  %v588_v53 = vxor.u32 %v1947_v38, %v583_v49  ;;  %s1703_s0 = scalar_lea.vmem %s1702_s27, 4096  ;;  %p1704_p10 = scmp.lt.s32.totalorder %s2479_s20, %s1702_s27 }
  0x46   : > { %v281_v12 = vadd.f32 %v280_v11, %v279_v10  ;;  %v589_v63 = vxor.u32 %v1947_v38, %v584_v59  ;;  %s542_s11 = smul.f32 16777216.0, %s541_s10 }
  0x47   : > { %v598_v44 = vxor.u32 %v1436_v41, %v586_v39  ;;  %v1437_v48 = vshrl.u32 %v587_v45, 16  ;;  %v1438_v57 = vshrl.u32 %v588_v53, 16 }
  0x48   : > { %v282_v13 = vrot.slane %v281_v12, 2  ;;  %v1439_v5 = vshrl.u32 %v589_v63, 16  ;;  %s543_s12 = sfloor.f32 %s542_s11 }
  0x49   : > { %462 = vxpose.xlu1.b32.cont [3/16] %v1938_v35, 128  ;;  %v602_v47 = vmul.u32 2246822507, %v598_v44  ;;  %v599_v52 = vxor.u32 %v1437_v48, %v587_v45  ;;  %v600_v62 = vxor.u32 %v1438_v57, %v588_v53  ;;  %v766_v53 = vmul.u32 2654435769, %v1987_v30  ;;  %s1602_s13 = scvt.f32.s32 %s543_s12 }
  0x4a   : > { %v283_v14 = vadd.f32 %v282_v13, %v281_v12  ;;  %v601_v10 = vxor.u32 %v1439_v5, %v589_v63  ;;  %v764_v12 = vmul.u32 2654435769, %v1973_v4 }
  0x4b   : > { %v1440_v51 = vshrl.u32 %v602_v47, 13  ;;  %v603_v56 = vmul.u32 2246822507, %v599_v52 }
  0x4c   : > { %v284_v15 = vrot.slane %v283_v14, 1 }
  0x4d   : > { %463 = vxpose.xlu1.b32.cont [4/16] %v1938_v35, 128  ;;  %v614_v55 = vxor.u32 %v1440_v51, %v602_v47  ;;  %v1441_v61 = vshrl.u32 %v603_v56, 13 }
  0x4e   : > { %v285_v16 = vadd.f32 %v284_v15, %v283_v14 }
  0x4f   : > { %v618_v60 = vmul.u32 3266489909, %v614_v55 }
  0x50   : > { %1662 = vrsqrt.f32 %v285_v16  ;;  %vm288_vm0 = vcmp.eq.f32.partialorder %v285_v16, inf  ;;  %v291_v18 = vand.u32 2147483648, %v285_v16  ;;  %vm290_vm1 = vcmp.eq.f32.partialorder %v285_v16, 0.0 }
  0x51   : > { %464 = vxpose.xlu1.b32.cont [5/16] %v1938_v35, 128 }
  0x55   : > { %465 = vxpose.xlu1.b32.cont [6/16] %v1938_v35, 128 }
  0x59   : > { %466 = vxpose.xlu1.b32.cont [7/16] %v1938_v35, 128 }
  0x5a   : > { %v1663_v17 = vpop.eup %1662 }
  0x5b   : > { %v287_v19 = vmul.f32 %v1663_v17, %v285_v16  ;;  %v605_v17 = vmul.u32 2246822507, %v601_v10 }
  0x5d   : > { %v289_v20 = vsel %vm288_vm0, %v285_v16, %v287_v19  ;;  %v1980_v16 = vadd.s32 32, %v1953_v43  ;;  %v768_v19 = vxor.u32 %v764_v12, %v1935_v34  ;;  %467 = vxpose.xlu1.b32.cont [8/16] %v1938_v35, 128 }
  0x5e   : > { %v292_v21 = vsel %vm290_vm1, %v291_v18, %v289_v20 }
  0x5f   : > { %v293_v22 = vmax.f32 %v292_v21, 1e-12  ;;  %vm761_vm14 = vcmp.ne.s32.totalorder %v1980_v16, %v1925_v32 }
  0x61   : > { %1664 = vrcp.f32 %v293_v22  ;;  %468 = vxpose.xlu1.b32.cont [9/16] %v1938_v35, 128 }
  0x65   : > { %469 = vxpose.xlu1.b32.cont [10/16] %v1938_v35, 128 }
  0x69   : > { %470 = vxpose.xlu1.b32.cont [11/16] %v1938_v35, 128 }
  0x6b   : > { %v1665_v23 = vpop.eup %1664 }
  0x6c   : > { %v295_v24 = vmul.f32 %v1665_v23, %v269_v0  ;;  %v296_v25 = vmul.f32 %v1665_v23, %v270_v1  ;;  %v297_v26 = vmul.f32 %v1665_v23, %v271_v2  ;;  %v298_v27 = vmul.f32 %v1665_v23, %v272_v3 }
  0x6d   : > { %v763_v0 = vmul.u32 2654435769, %v1966_v58  ;;  %v1444_v1 = vshrl.u32 %v618_v60, 16  ;;  %v615_v2 = vxor.u32 %v1441_v61, %v603_v56  ;;  %v604_v3 = vmul.u32 2246822507, %v600_v62  ;;  %471 = vxpose.xlu1.b32.cont [12/16] %v1938_v35, 128 }
  0x6e   : > { %v299_v28 = vpack.c.bf16 %v296_v25, %v295_v24  ;;  %v300_v29 = vpack.c.bf16 %v298_v27, %v297_v26  ;;  %v1443_v23 = vshrl.u32 %v605_v17, 13  ;;  %v772_v25 = vxor.u32 %v768_v19, %v1947_v38 }
  0x6f   : > { %v767_v6 = vxor.u32 %v763_v0, %v1935_v34  ;;  %v630_v7 = vxor.u32 %v1444_v1, %v618_v60  ;;  %v619_v8 = vmul.u32 3266489909, %v615_v2  ;;  %v1442_v9 = vshrl.u32 %v604_v3, 13 }
  0x70   : > { %301 = vxpose.xlu0.c.b16.start [1/2] (short) %v299_v28, 128  ;;  %1577 = vmatprep.subr.bf16.mxu0 %v299_v28  ;;  %v765_v26 = vmul.u32 2654435769, %v1980_v16  ;;  %v617_v33 = vxor.u32 %v1443_v23, %v605_v17  ;;  %v1465_v39 = vshrl.u32 %v772_v25, 16  ;;  %v770_v62 = vxor.u32 %v766_v53, %v1935_v34 }
  0x71   : > { %1578 = vmatpush3.bf16.msra.mxu0 %v299_v28  ;;  %1597 = vmatprep.subr.bf16.mxu1 %v299_v28  ;;  %v771_v11 = vxor.u32 %v767_v6, %v1947_v38  ;;  %v1448_v13 = vshrl.u32 %v630_v7, 16  ;;  %v1445_v14 = vshrl.u32 %v619_v8, 16  ;;  %v616_v15 = vxor.u32 %v1442_v9, %v604_v3 }
  0x72   : > { %1579 = vmatprep.subr.bf16.mxu0 %v300_v29  ;;  %1599 = vmatpush3.bf16.msra.mxu1 %v299_v28  ;;  %v769_v40 = vxor.u32 %v765_v26, %v1935_v34  ;;  %v621_v45 = vmul.u32 3266489909, %v617_v33  ;;  %v784_v47 = vxor.u32 %v1465_v39, %v772_v25 }
  0x73   : > { %1598 = vmatprep.subr.bf16.mxu1 %v300_v29  ;;  %v1464_v18 = vshrl.u32 %v771_v11, 16  ;;  %v642_v20 = vxor.u32 %v1448_v13, %v630_v7  ;;  %v631_v21 = vxor.u32 %v1445_v14, %v619_v8  ;;  %v620_v22 = vmul.u32 3266489909, %v616_v15  ;;  %472 = vxpose.xlu1.b32.cont [13/16] %v1938_v35, 128 }
  0x74   : > { %302 = vxpose.xlu0.c.b16.end [2/2] (short) %v300_v29, 128  ;;  %v773_v48 = vxor.u32 %v769_v40, %v1947_v38  ;;  %v1447_v54 = vshrl.u32 %v621_v45, 16  ;;  %v788_v56 = vmul.u32 2246822507, %v784_v47  ;;  %v774_v7 = vxor.u32 %v770_v62, %v1947_v38 }
  0x75   : > { %1580 = vmatpush3.bf16.msra.mxu0 %v300_v29  ;;  %v783_v24 = vxor.u32 %v1464_v18, %v771_v11  ;;  %v646_v27 = vmul.u32 2246822507, %v642_v20  ;;  %v1449_v28 = vshrl.u32 %v631_v21, 16 }
  0x76   : > { %1600 = vmatpush3.bf16.msra.mxu1 %v300_v29  ;;  %v1446_v29 = vshrl.u32 %v620_v22, 16  ;;  %v1466_v57 = vshrl.u32 %v773_v48, 16  ;;  %v633_v63 = vxor.u32 %v1447_v54, %v621_v45  ;;  %v1469_v1 = vshrl.u32 %v788_v56, 13 }
  0x77   : > { %v787_v36 = vmul.u32 2246822507, %v783_v24  ;;  %v1452_v41 = vshrl.u32 %v646_v27, 13  ;;  %v643_v42 = vxor.u32 %v1449_v28, %v631_v21  ;;  %v1467_v15 = vshrl.u32 %v774_v7, 16  ;;  %473 = vxpose.xlu1.b32.cont [14/16] %v1938_v35, 128 }
  0x78   : > { %v632_v44 = vxor.u32 %v1446_v29, %v620_v22  ;;  %v785_v2 = vxor.u32 %v1466_v57, %v773_v48  ;;  %v1451_v8 = vshrl.u32 %v633_v63, 16  ;;  %v800_v10 = vxor.u32 %v1469_v1, %v788_v56 }
  0x79   : > { %v1468_v46 = vshrl.u32 %v787_v36, 13  ;;  %v658_v49 = vxor.u32 %v1452_v41, %v646_v27  ;;  %v647_v51 = vmul.u32 2246822507, %v643_v42  ;;  %v786_v24 = vxor.u32 %v1467_v15, %v774_v7 }
  0x7a   : > { %v1450_v52 = vshrl.u32 %v632_v44, 16  ;;  %v789_v11 = vmul.u32 2246822507, %v785_v2  ;;  %v645_v17 = vxor.u32 %v1451_v8, %v633_v63  ;;  %v804_v19 = vmul.u32 3266489909, %v800_v10 }
  0x7b   : > { %v799_v55 = vxor.u32 %v1468_v46, %v787_v36  ;;  %v662_v59 = vmul.u32 3266489909, %v658_v49  ;;  %v1453_v60 = vshrl.u32 %v647_v51, 13  ;;  %v790_v47 = vmul.u32 2246822507, %v786_v24  ;;  %474 = vxpose.xlu1.b32.cont [15/16] %v1938_v35, 128 }
  0x7c   : > { %v644_v61 = vxor.u32 %v1450_v52, %v632_v44  ;;  %v1470_v20 = vshrl.u32 %v789_v11, 13  ;;  %v649_v25 = vmul.u32 2246822507, %v645_v17  ;;  %v1473_v27 = vshrl.u32 %v804_v19, 16 }
  0x7d   : > { %v803_v0 = vmul.u32 3266489909, %v799_v55  ;;  %v1456_v3 = vshrl.u32 %v662_v59, 16  ;;  %v659_v5 = vxor.u32 %v1453_v60, %v647_v51  ;;  %v1471_v55 = vshrl.u32 %v790_v47, 13 }
  0x7e   : > { %v648_v6 = vmul.u32 2246822507, %v644_v61  ;;  %v801_v28 = vxor.u32 %v1470_v20, %v789_v11  ;;  %v1455_v39 = vshrl.u32 %v649_v25, 13  ;;  %v816_v41 = vxor.u32 %v1473_v27, %v804_v19 }
  0x7f   : > { %v1472_v9 = vshrl.u32 %v803_v0, 16  ;;  %v1997_v12 = vxor.u32 %v1456_v3, %v662_v59  ;;  %v663_v13 = vmul.u32 3266489909, %v659_v5  ;;  %v802_v63 = vxor.u32 %v1471_v55, %v790_v47  ;;  %475 = vxpose.xlu1.b32.end [16/16] %v1938_v35, 128 }
  0x80   : > { %v1454_v14 = vshrl.u32 %v648_v6, 13  ;;  %v805_v42 = vmul.u32 3266489909, %v801_v28  ;;  %v661_v48 = vxor.u32 %v1455_v39, %v649_v25  ;;  %v1477_v51 = vshrl.u32 %v816_v41, 16 }
  0x81   : > { %v815_v18 = vxor.u32 %v1472_v9, %v803_v0  ;;  %v2537_v21 = vand.u32 16777215, %v1997_v12  ;;  %v1457_v22 = vshrl.u32 %v663_v13, 16  ;;  %v2017_v0 = vadd.s32 64, %v1923_v31 }
  0x82   : > { %v660_v23 = vxor.u32 %v1454_v14, %v648_v6  ;;  %v1474_v52 = vshrl.u32 %v805_v42, 16  ;;  %v665_v56 = vmul.u32 3266489909, %v661_v48  ;;  %v828_v59 = vxor.u32 %v1477_v51, %v816_v41 }
  0x83   : > { %v1476_v26 = vshrl.u32 %v815_v18, 16  ;;  %v711_v29 = vcvt.s32.f32 %v2537_v21  ;;  %v2004_v33 = vxor.u32 %v1457_v22, %v663_v13  ;;  %v806_v7 = vmul.u32 3266489909, %v802_v63 }
  0x84   : > { %v664_v36 = vmul.u32 3266489909, %v660_v23  ;;  %v817_v60 = vxor.u32 %v1474_v52, %v805_v42  ;;  %v1459_v1 = vshrl.u32 %v665_v56, 16  ;;  %v832_v3 = vmul.u32 2246822507, %v828_v59 }
  0x85   : > { %v827_v40 = vxor.u32 %v1476_v26, %v815_v18  ;;  %v715_v44 = vmul.f32 5.9604645e-08, %v711_v29  ;;  %v2535_v45 = vand.u32 16777215, %v2004_v33  ;;  %v1475_v14 = vshrl.u32 %v806_v7, 16 }
  0x86   : > { %v1458_v46 = vshrl.u32 %v664_v36, 16  ;;  %v1478_v5 = vshrl.u32 %v817_v60, 16  ;;  %v2023_v8 = vxor.u32 %v1459_v1, %v665_v56  ;;  %v1481_v10 = vshrl.u32 %v832_v3, 13 }
  0x87   : > { %v831_v49 = vmul.u32 2246822507, %v827_v40  ;;  %719 = vst [vmem:[%s2008_s30] sm:$0xff] %v715_v44  ;;  %v712_v53 = vcvt.s32.f32 %v2535_v45  ;;  %v948_v15 = vmul.u32 2654435769, %v2017_v0  ;;  %v818_v22 = vxor.u32 %v1475_v14, %v806_v7 }
  0x88   : > { %v2013_v54 = vxor.u32 %v1458_v46, %v664_v36  ;;  %v829_v11 = vxor.u32 %v1478_v5, %v817_v60  ;;  %v2534_v17 = vand.u32 16777215, %v2023_v8  ;;  %v844_v19 = vxor.u32 %v1481_v10, %v832_v3 }
  0x89   : > { %v1480_v57 = vshrl.u32 %v831_v49, 13  ;;  %v716_v61 = vmul.f32 5.9604645e-08, %v712_v53  ;;  %v952_v23 = vxor.u32 %v948_v15, %v1935_v34  ;;  %v1479_v28 = vshrl.u32 %v818_v22, 16 }
  0x8a   : > { %v2536_v62 = vand.u32 16777215, %v2013_v54  ;;  %v833_v20 = vmul.u32 2246822507, %v829_v11  ;;  %v714_v24 = vcvt.s32.f32 %v2534_v17  ;;  %v848_v26 = vmul.u32 3266489909, %v844_v19 }
  0x8b   : > { %v843_v2 = vxor.u32 %v1480_v57, %v831_v49  ;;  %720 = vst [vmem:[%s2008_s30 + $0x8] sm:$0xff] %v716_v61  ;;  %v956_v29 = vxor.u32 %v952_v23, %v1947_v38  ;;  %v830_v42 = vxor.u32 %v1479_v28, %v818_v22 }
  0x8c   : > { %v713_v6 = vcvt.s32.f32 %v2536_v62  ;;  %v1482_v27 = vshrl.u32 %v833_v20, 13  ;;  %v718_v36 = vmul.f32 5.9604645e-08, %v714_v24  ;;  %v1485_v40 = vshrl.u32 %v848_v26, 16 }
  0x8d   : > { %v847_v9 = vmul.u32 3266489909, %v843_v2  ;;  %v1496_v44 = vshrl.u32 %v956_v29, 16  ;;  %v834_v49 = vmul.u32 2246822507, %v830_v42 }
  0x8e   : > { %v717_v13 = vmul.f32 5.9604645e-08, %v713_v6  ;;  %v845_v41 = vxor.u32 %v1482_v27, %v833_v20  ;;  %722 = vst [vmem:[%s2008_s30 + $0x18] sm:$0xff] %v718_v36  ;;  %v2040_v47 = vxor.u32 %v1485_v40, %v848_v26 }
  0x8f   : > { %v1484_v18 = vshrl.u32 %v847_v9, 16  ;;  %v968_v51 = vxor.u32 %v1496_v44, %v956_v29  ;;  %v1483_v56 = vshrl.u32 %v834_v49, 13 }
  0x90   : > { %721 = vst [vmem:[%s2008_s30 + $0x10] sm:$0xff] %v717_v13  ;;  %v849_v48 = vmul.u32 3266489909, %v845_v41  ;;  %v864_v53 = vand.u32 16777215, %v2040_v47 }
  0x91   : > { %v2032_v25 = vxor.u32 %v1484_v18, %v847_v9  ;;  %v972_v57 = vmul.u32 2246822507, %v968_v51  ;;  %v846_v61 = vxor.u32 %v1483_v56, %v834_v49 }
  0x92   : > { %v1486_v55 = vshrl.u32 %v849_v48, 16  ;;  %v896_v59 = vcvt.s32.f32 %v864_v53 }
  0x93   : > { %v863_v39 = vand.u32 16777215, %v2032_v25  ;;  %v1500_v63 = vshrl.u32 %v972_v57, 13  ;;  %v850_v3 = vmul.u32 3266489909, %v846_v61  ;;  %v2110_v25 = vadd.s32 64, %v1944_v37 }
  0x94   : > { %v2047_v60 = vxor.u32 %v1486_v55, %v849_v48  ;;  %v900_v1 = vmul.f32 5.9604645e-08, %v896_v59 }
  0x95   : > { %v895_v46 = vcvt.s32.f32 %v863_v39  ;;  %v984_v5 = vxor.u32 %v1500_v63, %v972_v57  ;;  %v1487_v7 = vshrl.u32 %v850_v3, 16  ;;  %v2082_v63 = vstv %s1602_s13 }
  0x96   : > { %v865_v2 = vand.u32 16777215, %v2047_v60  ;;  %1493 = vst [vmem:[%s2008_s30 + $0x28] sm:$0xff] %v900_v1  ;;  %vm867_vm3 = vcmp.gt.s32.totalorder %v863_v39, %v2082_v63  ;;  %vm868_vm8 = vcmp.gt.s32.totalorder %v864_v53, %v2082_v63  ;;  %v949_v4 = vmul.u32 2654435769, %v2110_v25 }
  0x97   : > { %v899_v52 = vmul.f32 5.9604645e-08, %v895_v46  ;;  %v988_v9 = vmul.u32 3266489909, %v984_v5  ;;  %v2053_v11 = vxor.u32 %v1487_v7, %v850_v3  ;;  %v2131_v5 = vadd.s32 64, %v1953_v43 }
  0x98   : > { %v897_v6 = vcvt.s32.f32 %v865_v2  ;;  %vm869_vm13 = vcmp.gt.s32.totalorder %v865_v2, %v2082_v63  ;;  %v953_v53 = vxor.u32 %v949_v4, %v1935_v34 }
  0x99   : > { %1492 = vst [vmem:[%s2008_s30 + $0x20] sm:$0xff] %v899_v52  ;;  %v1504_v13 = vshrl.u32 %v988_v9, 16  ;;  %v866_v14 = vand.u32 16777215, %v2053_v11  ;;  %v950_v2 = vmul.u32 2654435769, %v2131_v5 }
  0x9a   : > { %v901_v10 = vmul.f32 5.9604645e-08, %v897_v6  ;;  %v957_v16 = vxor.u32 %v953_v53, %v1947_v38 }
  0x9b   : > { %v1000_v15 = vxor.u32 %v1504_v13, %v988_v9  ;;  %v898_v18 = vcvt.s32.f32 %v866_v14  ;;  %v954_v9 = vxor.u32 %v950_v2, %v1935_v34 }
  0x9c   : > { %1494 = vst [vmem:[%s2008_s30 + $0x30] sm:$0xff] %v901_v10  ;;  %v1497_v7 = vshrl.u32 %v957_v16, 16  ;;  %v2153_v10 = vadd.s32 64, %v1960_v50 }
  0x9d   : > { %v1508_v19 = vshrl.u32 %v1000_v15, 16  ;;  %v902_v20 = vmul.f32 5.9604645e-08, %v898_v18  ;;  %v958_v13 = vxor.u32 %v954_v9, %v1947_v38 }
  0x9f   : > { %v1012_v22 = vxor.u32 %v1508_v19, %v1000_v15  ;;  %1495 = vst [vmem:[%s2008_s30 + $0x38] sm:$0xff] %v902_v20  ;;  %v1498_v19 = vshrl.u32 %v958_v13, 16 }
  0xa1   : > { %v1016_v23 = vmul.u32 2246822507, %v1012_v22  ;;  %v2178_v22 = vadd.s32 96, %v1923_v31 }
  0xa3   : > { %v1512_v24 = vshrl.u32 %v1016_v23, 13 }
  0xa5   : > { %v1028_v26 = vxor.u32 %v1512_v24, %v1016_v23  ;;  %v970_v24 = vxor.u32 %v1498_v19, %v958_v13 }
  0xa7   : > { %v1032_v27 = vmul.u32 3266489909, %v1028_v26 }
  0xa9   : > { %v1516_v28 = vshrl.u32 %v1032_v27, 16 }
  0xab   : > { %v2060_v29 = vxor.u32 %v1516_v28, %v1032_v27  ;;  %v1133_v27 = vmul.u32 2654435769, %v2178_v22 }
  0xad   : > { %v1048_v36 = vand.u32 16777215, %v2060_v29  ;;  %v974_v29 = vmul.u32 2246822507, %v970_v24 }
  0xaf   : > { %v1080_v40 = vcvt.s32.f32 %v1048_v36 }
  0xb1   : > { %v1084_v42 = vmul.f32 5.9604645e-08, %v1080_v40  ;;  %v2187_v40 = vadd.s32 96, %v1944_v37 }
  0xb3   : > { %1524 = vst [vmem:[%s2008_s30 + $0x40] sm:$0xff] %v1084_v42  ;;  %v2191_v42 = vadd.s32 96, %v1953_v43 }
  0xc3   : > { %v2074_v56 = vpop.trf.xlu1 }
  0xc7   : > { %v2076_v57 = vpop.trf.xlu1 }
  0xcb   : > { %v2078_v59 = vpop.trf.xlu1 }
  0xcf   : > { %v2080_v61 = vpop.trf.xlu1 }
  0xd3   : > { %v2089_v1 = vpop.trf.xlu1 }
  0xd4   : > { %vm2544_vm5 = vcmp.eq.s32.totalorder %v2089_v1, %v1938_v35 }
  0xd5   : > { %vm871_vm6 = vmor %vm2544_vm5, %vm867_vm3  ;;  %vm762_vm3 = vcmp.ne.s32.totalorder %v1987_v30, %v1925_v32  ;;  %v969_v30 = vxor.u32 %v1497_v7, %v957_v16  ;;  %vm1130_vm5 = vcmp.ne.s32.totalorder %v2187_v40, %v1925_v32 }
  0xd6   : > { %v309_v41 = vpop.trf.xlu0  ;;  %vm2096_vm7 = vmand %vm871_vm6, %vm759_vm4 }
  0xd7   : > { %1581 = vmatprep.mubr.msk.bf16.mxu0 %vm317_vm2, %v309_v41  ;;  %v2105_v58 = vpop.trf.xlu1  ;;  %v973_v18 = vmul.u32 2246822507, %v969_v30  ;;  %v1137_v41 = vxor.u32 %v1133_v27, %v1935_v34 }
  0xd8   : > { %vm2540_vm10 = vcmp.eq.s32.totalorder %v2105_v58, %v1938_v35 }
  0xd9   : > { %vm872_vm11 = vmor %vm2540_vm10, %vm868_vm8  ;;  %vm947_vm10 = vcmp.ne.s32.totalorder %v2153_v10, %v1925_v32 }
  0xda   : > { %v310_v44 = vpop.trf.xlu0  ;;  %vm2115_vm12 = vmand %vm872_vm11, %vm760_vm9  ;;  %vm1052_vm9 = vcmp.gt.s32.totalorder %v1048_v36, %v2082_v63  ;;  %vm944_vm11 = vcmp.ne.s32.totalorder %v2017_v0, %v1925_v32  ;;  %v1501_v0 = vshrl.u32 %v973_v18, 13 }
  0xdb   : > { %1582 = vmatmul.mubr.msk.bf16.vlgmr.msra.gmra.mrb[0].mxu0 %vm317_vm2, %v310_v44  ;;  %v2125_v47 = vpop.trf.xlu1 }
  0xdc   : > { %vm2545_vm15 = vcmp.eq.s32.totalorder %v2125_v47, %v1938_v35  ;;  %v985_v28 = vxor.u32 %v1501_v0, %v973_v18 }
  0xdd   : > { %vm873_vm0 = vmor %vm2545_vm15, %vm869_vm13 }
  0xde   : > { %v311_v46 = vpop.trf.xlu0  ;;  %vm2136_vm1 = vmand %vm873_vm0, %vm761_vm14  ;;  %v989_v44 = vmul.u32 3266489909, %v985_v28 }
  0xdf   : > { %1585 = vmatprep.mubr.msk.bf16.mxu0 %vm317_vm2, %v311_v46  ;;  %v2147_v6 = vpop.trf.xlu1  ;;  %v1502_v46 = vshrl.u32 %v974_v29, 13 }
  0xe0   : > { %vm2543_vm4 = vcmp.eq.s32.totalorder %v2147_v6, %v1938_v35  ;;  %v1505_v4 = vshrl.u32 %v989_v44, 16 }
  0xe1   : > { %v986_v53 = vxor.u32 %v1502_v46, %v974_v29 }
  0xe2   : > { %v312_v48 = vpop.trf.xlu0  ;;  %v1001_v13 = vxor.u32 %v1505_v4, %v989_v44 }
  0xe3   : > { %1586 = vmatmul.mubr.msk.bf16.gmra.mrb[4].mxu0 %vm317_vm2, %v312_v48  ;;  %v2169_v15 = vpop.trf.xlu1 }
  0xe4   : > { %vm2539_vm13 = vcmp.eq.s32.totalorder %v2169_v15, %v1938_v35 }
  0xe5   : > { %vm1056_vm14 = vmor %vm2539_vm13, %vm1052_vm9 }
  0xe6   : > { %v313_v49 = vpop.trf.xlu0  ;;  %vm2180_vm0 = vmand %vm1056_vm14, %vm944_vm11 }
  0xe7   : > { %1589 = vmatprep.mubr.msk.bf16.mxu1 %vm317_vm2, %v313_v49  ;;  %v1134_v49 = vmul.u32 2654435769, %v2187_v40 }
  0xe9   : > { %v1138_v2 = vxor.u32 %v1134_v49, %v1935_v34 }
  0xea   : > { %v314_v51 = vpop.trf.xlu0 }
  0xeb   : > { %1590 = vmatmul.mubr.msk.bf16.vlgmr.msra.gmra.mrb[0].mxu1 %vm317_vm2, %v314_v51  ;;  %v1141_v51 = vxor.u32 %v1137_v41, %v1947_v38  ;;  %v1142_v19 = vxor.u32 %v1138_v2, %v1947_v38 }
  0xed   : > { %v1528_v7 = vshrl.u32 %v1141_v51, 16  ;;  %v1529_v29 = vshrl.u32 %v1142_v19, 16 }
  0xee   : > { %v315_v52 = vpop.trf.xlu0 }
  0xef   : > { %1593 = vmatprep.mubr.msk.bf16.mxu1 %vm317_vm2, %v315_v52  ;;  %v1135_v52 = vmul.u32 2654435769, %v2191_v42 }
  0xf1   : > { %v1139_v9 = vxor.u32 %v1135_v52, %v1935_v34  ;;  %v1154_v52 = vxor.u32 %v1529_v29, %v1142_v19 }
  0xf2   : > { %v316_v55 = vpop.trf.xlu0 }
  0xf3   : > { %1594 = vmatmul.mubr.msk.bf16.gmra.mrb[4].mxu1 %vm317_vm2, %v316_v55  ;;  %vm870_vm2 = vcmp.gt.s32.totalorder %v866_v14, %v2082_v63  ;;  %v951_v14 = vmul.u32 2654435769, %v2153_v10  ;;  %v2197_v55 = vadd.s32 96, %v1960_v50  ;;  %v1143_v0 = vxor.u32 %v1139_v9, %v1947_v38 }
  0xf4   : > { %vm874_vm6 = vmor %vm2543_vm4, %vm870_vm2  ;;  %v1158_v17 = vmul.u32 2246822507, %v1154_v52  ;;  %v2570_v10 = vmov 0 }
  0xf5   : > { %vm2158_vm8 = vmand %vm874_vm6, %vm762_vm3  ;;  %v955_v20 = vxor.u32 %v951_v14, %v1935_v34  ;;  %v1136_v30 = vmul.u32 2654435769, %v2197_v55  ;;  %v990_v14 = vmul.u32 3266489909, %v986_v53  ;;  %v1530_v41 = vshrl.u32 %v1143_v0, 16 }
  0xf6   : > { %v1533_v62 = vshrl.u32 %v1158_v17, 13  ;;  %vm945_vm3 = vcmp.ne.s32.totalorder %v2110_v25, %v1925_v32  ;;  %v2566_v25 = vmov 0 }
  0xf7   : > { %v959_v26 = vxor.u32 %v955_v20, %v1947_v38  ;;  %v1153_v20 = vxor.u32 %v1528_v7, %v1141_v51  ;;  %v1140_v24 = vxor.u32 %v1136_v30, %v1935_v34  ;;  %v1506_v27 = vshrl.u32 %v990_v14, 16 }
  0xf8   : > { %v1155_v53 = vxor.u32 %v1530_v41, %v1143_v0 }
  0xf9   : > { %v1499_v36 = vshrl.u32 %v959_v26, 16  ;;  %v1144_v46 = vxor.u32 %v1140_v24, %v1947_v38  ;;  %v1002_v49 = vxor.u32 %v1506_v27, %v990_v14 }
  0xfa   : > { %v1159_v30 = vmul.u32 2246822507, %v1155_v53 }
  0xfb   : > { %v971_v48 = vxor.u32 %v1499_v36, %v959_v26  ;;  %v1509_v26 = vshrl.u32 %v1001_v13, 16  ;;  %v1157_v36 = vmul.u32 2246822507, %v1153_v20  ;;  %v1531_v2 = vshrl.u32 %v1144_v46, 16 }
  0xfc   : > { %v1510_v7 = vshrl.u32 %v1002_v49, 16  ;;  %v1534_v38 = vshrl.u32 %v1159_v30, 13 }
  0xfd   : > { %v975_v16 = vmul.u32 2246822507, %v971_v48  ;;  %v1013_v48 = vxor.u32 %v1509_v26, %v1001_v13  ;;  %v1532_v4 = vshrl.u32 %v1157_v36, 13  ;;  %v1156_v45 = vxor.u32 %v1531_v2, %v1144_v46 }
  0xfe   : > { %v1170_v26 = vxor.u32 %v1533_v62, %v1158_v17  ;;  %v1171_v27 = vxor.u32 %v1534_v38, %v1159_v30 }
  0xff   : > { %v1503_v18 = vshrl.u32 %v975_v16, 13  ;;  %v1017_v51 = vmul.u32 2246822507, %v1013_v48  ;;  %v1169_v34 = vxor.u32 %v1532_v4, %v1157_v36  ;;  %v1160_v13 = vmul.u32 2246822507, %v1156_v45 }
 0x100   : > { %v1174_v36 = vmul.u32 3266489909, %v1170_v26  ;;  %v1175_v46 = vmul.u32 3266489909, %v1171_v27 }
 0x101   : > { %v987_v28 = vxor.u32 %v1503_v18, %v975_v16  ;;  %v1513_v16 = vshrl.u32 %v1017_v51, 13  ;;  %v1014_v18 = vxor.u32 %v1510_v7, %v1002_v49  ;;  %v1173_v21 = vmul.u32 3266489909, %v1169_v34 }
 0x102   : > { %v1537_v45 = vshrl.u32 %v1174_v36, 16  ;;  %v1538_v7 = vshrl.u32 %v1175_v46, 16 }
 0x103   : > { %v991_v44 = vmul.u32 3266489909, %v987_v28  ;;  %v1029_v14 = vxor.u32 %v1513_v16, %v1017_v51  ;;  %v1018_v24 = vmul.u32 2246822507, %v1014_v18  ;;  %v1536_v0 = vshrl.u32 %v1173_v21, 16 }
 0x104   : > { %v1535_v28 = vshrl.u32 %v1160_v13, 13  ;;  %v1186_v30 = vxor.u32 %v1537_v45, %v1174_v36  ;;  %v1187_v18 = vxor.u32 %v1538_v7, %v1175_v46 }
 0x105   : > { %v1507_v9 = vshrl.u32 %v991_v44, 16  ;;  %v1033_v29 = vmul.u32 3266489909, %v1029_v14  ;;  %v1514_v41 = vshrl.u32 %v1018_v24, 13  ;;  %v1185_v52 = vxor.u32 %v1536_v0, %v1173_v21 }
 0x106   : > { %v1172_v4 = vxor.u32 %v1535_v28, %v1160_v13  ;;  %v1541_v26 = vshrl.u32 %v1186_v30, 16  ;;  %v1542_v0 = vshrl.u32 %v1187_v18, 16 }
 0x107   : > { %v1003_v20 = vxor.u32 %v1507_v9, %v991_v44  ;;  %v1517_v49 = vshrl.u32 %v1033_v29, 16  ;;  %v2206_v44 = vpop.trf.xlu1  ;;  %v1030_v53 = vxor.u32 %v1514_v41, %v1018_v24  ;;  %v1540_v51 = vshrl.u32 %v1185_v52, 16 }
 0x108   : > { %v1176_v9 = vmul.u32 3266489909, %v1172_v4  ;;  %vm2538_vm2 = vcmp.eq.s32.totalorder %v2206_v44, %v1938_v35  ;;  %v1199_v46 = vxor.u32 %v1542_v0, %v1187_v18 }
 0x109   : > { %v1511_v19 = vshrl.u32 %v1003_v20, 16  ;;  %v1045_v62 = vxor.u32 %v1517_v49, %v1033_v29  ;;  %v1034_v17 = vmul.u32 3266489909, %v1030_v53  ;;  %v1197_v16 = vxor.u32 %v1540_v51, %v1185_v52 }
 0x10a   : > { %v1198_v52 = vxor.u32 %v1541_v26, %v1186_v30  ;;  %v1203_v51 = vmul.u32 2246822507, %v1199_v46 }
 0x10b   : > { %v1015_v48 = vxor.u32 %v1511_v19, %v1003_v20  ;;  %v1539_v20 = vshrl.u32 %v1176_v9, 16  ;;  %v1049_v38 = vand.u32 16777215, %v1045_v62  ;;  %v2210_v21 = vpop.trf.xlu1  ;;  %v1518_v13 = vshrl.u32 %v1034_v17, 16 }
 0x10c   : > { %v1201_v24 = vmul.u32 2246822507, %v1197_v16  ;;  %vm2541_vm14 = vcmp.eq.s32.totalorder %v2210_v21, %v1938_v35  ;;  %v1202_v45 = vmul.u32 2246822507, %v1198_v52  ;;  %v1546_v30 = vshrl.u32 %v1203_v51, 13 }
 0x10d   : > { %v1019_v2 = vmul.u32 2246822507, %v1015_v48  ;;  %vm1053_vm6 = vcmp.gt.s32.totalorder %v1049_v38, %v2082_v63  ;;  %v1081_v19 = vcvt.s32.f32 %v1049_v38  ;;  %v1046_v27 = vxor.u32 %v1518_v13, %v1034_v17 }
 0x10e   : > { %vm1057_vm9 = vmor %vm2538_vm2, %vm1053_vm6  ;;  %v1544_v29 = vshrl.u32 %v1201_v24, 13  ;;  %v1188_v41 = vxor.u32 %v1539_v20, %v1176_v9  ;;  %vm946_vm6 = vcmp.ne.s32.totalorder %v2131_v5, %v1925_v32 }
 0x10f   : > { %v1515_v34 = vshrl.u32 %v1019_v2, 13  ;;  %v1085_v48 = vmul.f32 5.9604645e-08, %v1081_v19  ;;  %vm2218_vm11 = vmand %vm1057_vm9, %vm945_vm3  ;;  %v2224_v36 = vpop.trf.xlu1  ;;  %v1050_v4 = vand.u32 16777215, %v1046_v27 }
 0x110   : > { %v2567_v25 = vsel %vm2218_vm11, 4294967295, %v2566_v25  ;;  %v1213_v53 = vxor.u32 %v1544_v29, %v1201_v24  ;;  %vm2542_vm13 = vcmp.eq.s32.totalorder %v2224_v36, %v1938_v35  ;;  %v1215_v24 = vxor.u32 %v1546_v30, %v1203_v51 }
 0x111   : > { %v1031_v14 = vxor.u32 %v1515_v34, %v1019_v2  ;;  %v1543_v2 = vshrl.u32 %v1188_v41, 16  ;;  %1525 = vst [vmem:[%s2008_s30 + $0x48] sm:$0xff] %v1085_v48  ;;  %vm1054_vm3 = vcmp.gt.s32.totalorder %v1050_v4, %v2082_v63  ;;  %v1082_v7 = vcvt.s32.f32 %v1050_v4 }
 0x112   : > { %v1217_v62 = vmul.u32 3266489909, %v1213_v53  ;;  %vm1058_vm9 = vmor %vm2541_vm14, %vm1054_vm3  ;;  %v1545_v34 = vshrl.u32 %v1202_v45, 13  ;;  %v1219_v29 = vmul.u32 3266489909, %v1215_v24 }
 0x113   : > { %v1035_v28 = vmul.u32 3266489909, %v1031_v14  ;;  %v2233_v17 = vpop.trf.xlu1  ;;  %v1200_v16 = vxor.u32 %v1543_v2, %v1188_v41  ;;  %v1086_v18 = vmul.f32 5.9604645e-08, %v1082_v7  ;;  %vm2235_vm2 = vmand %vm1058_vm9, %vm946_vm6  ;;  %v2572_v7 = vmov 0 }
 0x114   : > { %v1548_v38 = vshrl.u32 %v1217_v62, 16  ;;  %v1214_v13 = vxor.u32 %v1545_v34, %v1202_v45  ;;  %vm2546_vm14 = vcmp.eq.s32.totalorder %v2233_v17, %v1938_v35  ;;  %v1550_v46 = vshrl.u32 %v1219_v29, 16 }
 0x115   : > { %v1519_v49 = vshrl.u32 %v1035_v28, 16  ;;  %1526 = vst [vmem:[%s2008_s30 + $0x50] sm:$0xff] %v1086_v18  ;;  %v1204_v19 = vmul.u32 2246822507, %v1200_v16 }
 0x116   : > { %v1229_v26 = vxor.u32 %v1548_v38, %v1217_v62  ;;  %v1218_v0 = vmul.u32 3266489909, %v1214_v13  ;;  %v1231_v45 = vxor.u32 %v1550_v46, %v1219_v29 }
 0x117   : > { %v1047_v9 = vxor.u32 %v1519_v49, %v1035_v28  ;;  %v2248_v27 = vpop.trf.xlu1  ;;  %v1547_v41 = vshrl.u32 %v1204_v19, 13 }
 0x118   : > { %v1233_v48 = vand.u32 16777215, %v1229_v26  ;;  %v1549_v52 = vshrl.u32 %v1218_v0, 16  ;;  %vm2547_vm4 = vcmp.eq.s32.totalorder %v2248_v27, %v1938_v35  ;;  %v1235_v62 = vand.u32 16777215, %v1231_v45 }
 0x119   : > { %v1051_v20 = vand.u32 16777215, %v1047_v9  ;;  %v1216_v4 = vxor.u32 %v1547_v41, %v1204_v19  ;;  %v2578_v26 = vmov 0 }
 0x11a   : > { %v1265_v49 = vcvt.s32.f32 %v1233_v48  ;;  %v1230_v53 = vxor.u32 %v1549_v52, %v1218_v0  ;;  %v1267_v40 = vcvt.s32.f32 %v1235_v62  ;;  %v2580_v0 = vand.u32 16777215, %v1997_v12 }
 0x11b   : > { %vm1055_vm3 = vcmp.gt.s32.totalorder %v1051_v20, %v2082_v63  ;;  %v1083_v14 = vcvt.s32.f32 %v1051_v20  ;;  %v2260_v2 = vpop.trf.xlu1  ;;  %v1220_v9 = vmul.u32 3266489909, %v1216_v4  ;;  %v2574_v20 = vmov 0 }
 0x11c   : > { %vm1059_vm6 = vmor %vm2542_vm13, %vm1055_vm3  ;;  %vm1129_vm3 = vcmp.ne.s32.totalorder %v2178_v22, %v1925_v32  ;;  %vm1237_vm13 = vcmp.gt.s32.totalorder %v1233_v48, %v2082_v63  ;;  %v1269_v51 = vmul.f32 5.9604645e-08, %v1265_v49  ;;  %v1234_v22 = vand.u32 16777215, %v1230_v53 }
 0x11d   : > { %v1087_v28 = vmul.f32 5.9604645e-08, %v1083_v14  ;;  %vm2250_vm9 = vmand %vm1059_vm6, %vm947_vm10  ;;  %v1551_v30 = vshrl.u32 %v1220_v9, 16  ;;  %v1271_v13 = vmul.f32 5.9604645e-08, %v1267_v40 }
 0x11e   : > { %v2571_v10 = vsel %vm2250_vm9, 4294967295, %v2570_v10  ;;  %vm1241_vm10 = vmor %vm2546_vm14, %vm1237_vm13  ;;  %1556 = vst [vmem:[%s2008_s30 + $0x60] sm:$0xff] %v1269_v51  ;;  %vm1238_vm15 = vcmp.gt.s32.totalorder %v1234_v22, %v2082_v63  ;;  %v1266_v34 = vcvt.s32.f32 %v1234_v22  ;;  %vm2548_vm13 = vcmp.eq.s32.totalorder %v2260_v2, %v1938_v35 }
 0x11f   : > { %1527 = vst [vmem:[%s2008_s30 + $0x58] sm:$0xff] %v1087_v28  ;;  %vm2265_vm6 = vmand %vm1241_vm10, %vm1129_vm3  ;;  %vm1131_vm10 = vcmp.ne.s32.totalorder %v2191_v42, %v1925_v32  ;;  %vm1239_vm14 = vcmp.gt.s32.totalorder %v1235_v62, %v2082_v63  ;;  %v2283_v16 = vpop.trf.xlu1  ;;  %v1232_v38 = vxor.u32 %v1551_v30, %v1220_v9  ;;  %v2576_v42 = vmov 0 }
 0x120   : > { %v2573_v7 = vsel %vm2265_vm6, 4294967295, %v2572_v7  ;;  %vm1242_vm3 = vmor %vm2547_vm4, %vm1238_vm15  ;;  %v1270_v18 = vmul.f32 5.9604645e-08, %v1266_v34  ;;  %vm2549_vm11 = vcmp.eq.s32.totalorder %v2283_v16, %v1938_v35  ;;  %1558 = vst [vmem:[%s2008_s30 + $0x70] sm:$0xff] %v1271_v13  ;;  %v2582_v28 = vand.u32 16777215, %v2004_v33 }
 0x121   : > { %vm2285_vm6 = vmand %vm1242_vm3, %vm1130_vm5  ;;  %v1236_v14 = vand.u32 16777215, %v1232_v38  ;;  %vm1132_vm5 = vcmp.ne.s32.totalorder %v2197_v55, %v1925_v32  ;;  %v2581_v55 = vand.u32 16777215, %v2013_v54  ;;  %v2585_v54 = vand.u32 16777215, %v2023_v8 }
 0x122   : > { %v2575_v20 = vsel %vm2285_vm6, 4294967295, %v2574_v20  ;;  %vm1243_vm15 = vmor %vm2548_vm13, %vm1239_vm14  ;;  %1557 = vst [vmem:[%s2008_s30 + $0x68] sm:$0xff] %v1270_v18  ;;  %vm2550_vm13 = vcmp.eq.s32.totalorder %v2074_v56, %v1938_v35  ;;  %v1666_v33 = vld [vmem:[%s1931_s18] ss:$0 sm:$0xff]  ;;  %s1697_s18 = scalar_lea.vmem %s2479_s20, 2048 }
 0x123   : > { %vm2293_vm4 = vmand %vm1243_vm15, %vm1131_vm10  ;;  %vm1240_vm3 = vcmp.gt.s32.totalorder %v1236_v14, %v2082_v63  ;;  %v1268_v24 = vcvt.s32.f32 %v1236_v14  ;;  %vm683_vm15 = vcmp.gt.s32.totalorder %v2580_v0, %v2082_v63  ;;  %vm685_vm6 = vcmp.gt.s32.totalorder %v2581_v55, %v2082_v63  ;;  %p1698_p11 = scmp.ne.s32.totalorder %s2479_s20, %s1697_s18  ;;  %p1705_p0 = scmp.lt.s32.totalorder %s1703_s0, %s1697_s18 }
 0x124   : > { %v2577_v42 = vsel %vm2293_vm4, 4294967295, %v2576_v42  ;;  %vm1244_vm14 = vmor %vm2549_vm11, %vm1240_vm3  ;;  %vm2591_vm3 = vcmp.eq.s32.totalorder %v2076_v57, %v1938_v35 }
 0x125   : > { %v1272_v19 = vmul.f32 5.9604645e-08, %v1268_v24  ;;  %vm2306_vm10 = vmand %vm1244_vm14, %vm1132_vm5  ;;  %vm684_vm5 = vcmp.gt.s32.totalorder %v2582_v28, %v2082_v63  ;;  %p1699_p13 = pnand %p1698_p11, %p2626_p12  ;;  %p1706_p2 = por %p1705_p0, %p1704_p10 }
 0x126   : > { %v2579_v26 = vsel %vm2306_vm10, 4294967295, %v2578_v26  ;;  %vm2329_vm11 = vmor %vm2550_vm13, %vm683_vm15  ;;  %vm2336_vm10 = vcmp.gt.s32.totalorder %v2585_v54, %v2082_v63  ;;  %vm2588_vm15 = vcmp.eq.s32.totalorder %v2078_v59, %v1938_v35 }
 0x127   : > { %1559 = vst [vmem:[%s2008_s30 + $0x78] sm:$0xff] %v1272_v19  ;;  %vm2347_vm13 = vmor %vm2588_vm15, %vm685_vm6  ;;  %vm2594_vm15 = vcmp.eq.s32.totalorder %v2080_v61, %v1666_v33  ;;  %p1700_p8 = pneg %p1699_p13 }
 0x128   : > { %vm2356_vm9 = vmor %vm2591_vm3, %vm684_vm5  ;;  %vm573_vm3 = vcmp.ne.s32.totalorder %v1944_v37, %v1925_v32  ;;  %vm2595_vm5 = vcmp.ne.s32.totalorder %v1953_v43, %v1925_v32 }
 0x129   : > { %vm690_vm14 = vmor %vm2594_vm15, %vm2336_vm10  ;;  %vm2598_vm10 = vcmp.eq.s32.totalorder %v2078_v59, %v1938_v35  ;;  %vm2599_vm15 = vcmp.ne.s32.totalorder %v1923_v31, %v1925_v32  ;;  %p1707_p4 = pnand %p1706_p2, %p1700_p8 }
 0x12a   : > { %vm2373_vm4 = vmand %vm2347_vm13, %vm2595_vm5  ;;  %vm2602_vm13 = vcmp.eq.s32.totalorder %v2074_v56, %v1938_v35  ;;  %vm2603_vm5 = vcmp.ne.s32.totalorder %v1960_v50, %v1925_v32 }
 0x12b   : > { %vm2385_vm6 = vmand %vm2329_vm11, %vm2599_vm15  ;;  %vm2606_vm11 = vcmp.eq.s32.totalorder %v2080_v61, %v1666_v33 }
 0x12c   : > { %vm692_vm15 = vmand %vm2356_vm9, %vm573_vm3  ;;  %vm2609_vm9 = vcmp.eq.s32.totalorder %v2089_v1, %v1938_v35  ;;  %vm2616_vm3 = vnez %v2571_v10 }
 0x1ae   : > { %v1583_v29 = vpop.f32.mrb[0].mxu0 }
 0x1af   : > { %v1462_v48 = vadd.f32 -0.5, %v1583_v29  ;;  %v376_v52 = vpop.f32.mrb[1].mxu0  ;;  %v697_v49 = vsub.f32 1.0, %v1583_v29 }
 0x1b0   : > { %v1460_v8 = vadd.f32 -0.5, %v376_v52  ;;  %v1584_v63 = vpop.f32.mrb[2].mxu0  ;;  %v695_v22 = vsub.f32 1.0, %v376_v52 }
 0x1b1   : > { %v705_v53 = vmax.f32 %v1462_v48, 0.0  ;;  %v1463_v45 = vadd.f32 -0.5, %v1584_v63  ;;  %v379_v51 = vpop.f32.mrb[3].mxu0  ;;  %v698_v30 = vsub.f32 1.0, %v1584_v63 }
 0x1b2   : > { %v703_v9 = vmax.f32 %v1460_v8, 0.0  ;;  %v1461_v62 = vadd.f32 -0.5, %v379_v51  ;;  %v696_v38 = vsub.f32 1.0, %v379_v51 }
 0x1b3   : > { %v706_v40 = vmax.f32 %v1463_v45, 0.0  ;;  %v709_v18 = vsel %vm2598_vm10, %v697_v49, %v705_v53  ;;  %vm2397_vm10 = vmand %vm690_vm14, %vm2603_vm5  ;;  %vm2610_vm14 = vcmp.eq.s32.totalorder %v2147_v6, %v1938_v35  ;;  %vm2619_vm5 = vcmp.eq.s32.totalorder %v2233_v17, %v1938_v35 }
 0x1b4   : > { %v707_v43 = vsel %vm2602_vm13, %v695_v22, %v703_v9  ;;  %v704_v13 = vmax.f32 %v1461_v62, 0.0  ;;  %v725_v14 = vsel %vm2373_vm4, %v709_v18, 0.0  ;;  %vm2607_vm13 = vcmp.eq.s32.totalorder %v2076_v57, %v1938_v35 }
 0x1b5   : > { %v710_v59 = vsel %vm2606_vm11, %v698_v30, %v706_v40  ;;  %v723_v24 = vsel %vm2385_vm6, %v707_v43, 0.0  ;;  %vm2608_vm4 = vcmp.eq.s32.totalorder %v2125_v47, %v1938_v35  ;;  %vm2611_vm6 = vcmp.eq.s32.totalorder %v2105_v58, %v1938_v35 }
 0x1b6   : > { %v708_v56 = vsel %vm2607_vm13, %v696_v38, %v704_v13  ;;  %v1587_v19 = vpop.f32.mrb[4].mxu0  ;;  %v726_v32 = vsel %vm2397_vm10, %v710_v59, 0.0  ;;  %vm2620_vm10 = vnez %v2577_v42  ;;  %vm2621_vm11 = vcmp.eq.s32.totalorder %v2283_v16, %v1938_v35 }
 0x1b7   : > { %v1490_v50 = vadd.f32 -0.5, %v1587_v19  ;;  %v392_v0 = vpop.f32.mrb[5].mxu0  ;;  %v724_v55 = vsel %vm692_vm15, %v708_v56, 0.0  ;;  %v881_v12 = vsub.f32 1.0, %v1587_v19  ;;  %vm2622_vm15 = vnez %v2573_v7 }
 0x1b8   : > { %v1488_v28 = vadd.f32 -0.5, %v392_v0  ;;  %v1588_v61 = vpop.f32.mrb[6].mxu0  ;;  %v727_v29 = vadd.f32 %v724_v55, %v723_v24  ;;  %v879_v48 = vsub.f32 1.0, %v392_v0  ;;  %vm2623_vm13 = vcmp.eq.s32.totalorder %v2248_v27, %v1938_v35 }
 0x1b9   : > { %v889_v54 = vmax.f32 %v1490_v50, 0.0  ;;  %v1491_v41 = vadd.f32 -0.5, %v1588_v61  ;;  %v395_v33 = vpop.f32.mrb[7].mxu0  ;;  %v882_v57 = vsub.f32 1.0, %v1588_v61 }
 0x1ba   : > { %v887_v52 = vmax.f32 %v1488_v28, 0.0  ;;  %v1489_v46 = vadd.f32 -0.5, %v395_v33  ;;  %v728_v8 = vadd.f32 %v727_v29, %v725_v14  ;;  %v880_v4 = vsub.f32 1.0, %v395_v33 }
 0x1bb   : > { %v890_v63 = vmax.f32 %v1491_v41, 0.0  ;;  %v893_v49 = vsel %vm2608_vm4, %v881_v12, %v889_v54  ;;  %vm2624_vm4 = vnez %v2579_v26 }
 0x1bc   : > { %v891_v53 = vsel %vm2609_vm9, %v879_v48, %v887_v52  ;;  %v888_v45 = vmax.f32 %v1489_v46, 0.0  ;;  %v729_v51 = vadd.f32 %v728_v8, %v726_v32  ;;  %v910_v22 = vsel %vm2136_vm1, %v893_v49, 0.0 }
 0x1bd   : > { %v894_v9 = vsel %vm2610_vm14, %v882_v57, %v890_v63  ;;  %v908_v62 = vsel %vm2096_vm7, %v891_v53, 0.0  ;;  %vm2612_vm7 = vcmp.eq.s32.totalorder %v2210_v21, %v1938_v35  ;;  %vm2614_vm1 = vcmp.eq.s32.totalorder %v2224_v36, %v1938_v35 }
 0x1be   : > { %v892_v47 = vsel %vm2611_vm6, %v880_v4, %v888_v45  ;;  %v1591_v34 = vpop.f32.mrb[0].mxu1  ;;  %730 = vadd.xlane.f32.xlu0 %v729_v51  ;;  %v911_v1 = vsel %vm2158_vm8, %v894_v9, 0.0  ;;  %vm2615_vm8 = vcmp.eq.s32.totalorder %v2206_v44, %v1938_v35  ;;  %vm2625_vm9 = vnez %v2575_v20 }
 0x1bf   : > { %v909_v60 = vsel %vm2115_vm12, %v892_v47, 0.0  ;;  %v1522_v30 = vadd.f32 -0.5, %v1591_v34  ;;  %v408_v40 = vpop.f32.mrb[1].mxu1  ;;  %v1066_v43 = vsub.f32 1.0, %v1591_v34  ;;  %vm2613_vm12 = vcmp.eq.s32.totalorder %v2169_v15, %v1938_v35 }
 0x1c0   : > { %v1520_v18 = vadd.f32 -0.5, %v408_v40  ;;  %v1592_v6 = vpop.f32.mrb[2].mxu1  ;;  %v912_v37 = vadd.f32 %v909_v60, %v908_v62  ;;  %v1064_v14 = vsub.f32 1.0, %v408_v40 }
 0x1c1   : > { %v1074_v3 = vmax.f32 %v1522_v30, 0.0  ;;  %v1523_v38 = vadd.f32 -0.5, %v1592_v6  ;;  %v411_v13 = vpop.f32.mrb[3].mxu1  ;;  %v1067_v24 = vsub.f32 1.0, %v1592_v6 }
 0x1c2   : > { %v1072_v58 = vmax.f32 %v1520_v18, 0.0  ;;  %v1521_v31 = vadd.f32 -0.5, %v411_v13  ;;  %v913_v59 = vadd.f32 %v912_v37, %v910_v22  ;;  %v1065_v11 = vsub.f32 1.0, %v411_v13 }
 0x1c3   : > { %v1075_v56 = vmax.f32 %v1523_v38, 0.0  ;;  %v1078_v39 = vsel %vm2612_vm7, %v1066_v43, %v1074_v3 }
 0x1c4   : > { %v1076_v19 = vsel %vm2613_vm12, %v1064_v14, %v1072_v58  ;;  %v1073_v32 = vmax.f32 %v1521_v31, 0.0  ;;  %v914_v50 = vadd.f32 %v913_v59, %v911_v1  ;;  %v1095_v0 = vsel %vm2235_vm2, %v1078_v39, 0.0 }
 0x1c5   : > { %v1079_v55 = vsel %vm2614_vm1, %v1067_v24, %v1075_v56  ;;  %v1093_v28 = vsel %vm2180_vm0, %v1076_v19, 0.0  ;;  %vm2617_vm2 = vnez %v2567_v25  ;;  %vm2618_vm0 = vcmp.eq.s32.totalorder %v2260_v2, %v1938_v35 }
 0x1c6   : > { %v1077_v21 = vsel %vm2615_vm8, %v1065_v11, %v1073_v32  ;;  %v1595_v61 = vpop.f32.mrb[4].mxu1  ;;  %915 = vadd.xlane.f32.xlu0 %v914_v50  ;;  %v1096_v15 = vsel %vm2616_vm3, %v1079_v55, 0.0 }
 0x1c7   : > { %v1554_v29 = vadd.f32 -0.5, %v1595_v61  ;;  %v424_v12 = vpop.f32.mrb[5].mxu1  ;;  %v1094_v5 = vsel %vm2617_vm2, %v1077_v21, 0.0  ;;  %v1251_v33 = vsub.f32 1.0, %v1595_v61 }
 0x1c8   : > { %v1552_v54 = vadd.f32 -0.5, %v424_v12  ;;  %v1596_v36 = vpop.f32.mrb[6].mxu1  ;;  %v1097_v41 = vadd.f32 %v1094_v5, %v1093_v28  ;;  %v1249_v46 = vsub.f32 1.0, %v424_v12 }
 0x1c9   : > { %v1259_v23 = vmax.f32 %v1554_v29, 0.0  ;;  %v1555_v48 = vadd.f32 -0.5, %v1596_v36  ;;  %v427_v52 = vpop.f32.mrb[7].mxu1  ;;  %v1252_v63 = vsub.f32 1.0, %v1596_v36 }
 0x1ca   : > { %v1257_v44 = vmax.f32 %v1552_v54, 0.0  ;;  %v1553_v8 = vadd.f32 -0.5, %v427_v52  ;;  %v1098_v57 = vadd.f32 %v1097_v41, %v1095_v0  ;;  %v1250_v10 = vsub.f32 1.0, %v427_v52 }
 0x1cb   : > { %v1260_v4 = vmax.f32 %v1555_v48, 0.0  ;;  %v1263_v25 = vsel %vm2618_vm0, %v1251_v33, %v1259_v23 }
 0x1cc   : > { %v1261_v49 = vsel %vm2619_vm5, %v1249_v46, %v1257_v44  ;;  %v1258_v53 = vmax.f32 %v1553_v8, 0.0  ;;  %v1099_v45 = vadd.f32 %v1098_v57, %v1096_v15  ;;  %v1280_v51 = vsel %vm2620_vm10, %v1263_v25, 0.0 }
 0x1cd   : > { %v1264_v22 = vsel %vm2621_vm11, %v1252_v63, %v1260_v4  ;;  %v1278_v2 = vsel %vm2622_vm15, %v1261_v49, 0.0 }
 0x1ce   : > { %v1262_v17 = vsel %vm2623_vm13, %v1250_v10, %v1258_v53  ;;  %1100 = vadd.xlane.f32.xlu0 %v1099_v45  ;;  %v1281_v9 = vsel %vm2624_vm4, %v1264_v22, 0.0 }
 0x1cf   : > { %v1279_v42 = vsel %vm2625_vm9, %v1262_v17, 0.0 }
 0x1d0   : > { %v1282_v62 = vadd.f32 %v1279_v42, %v1278_v2 }
 0x1d2   : > { %v1283_v47 = vadd.f32 %v1282_v62, %v1280_v51 }
 0x1d4   : > { %v1284_v34 = vadd.f32 %v1283_v47, %v1281_v9 }
 0x1d6   : > { %1285 = vadd.xlane.f32.xlu0 %v1284_v34 }
 0x1d7   : > { %1710 = shalt.err (!%p1707_p4)
}
 0x1d8   : > { %s1711_s28 = scalar_lea.hbm %s2477_s16, 2048  ;;  %s1715_s10 = scalar_lea.hbm %s2532_s5, 4096 }
 0x1d9   : > { %p1712_p5 = scmp.ne.s32.totalorder %s2477_s16, %s1711_s28  ;;  %p1716_p1 = scmp.lt.u32.totalorder %s2477_s16, %s2532_s5 }
 0x1da   : > { %p1717_p3 = scmp.lt.u32.totalorder %s1715_s10, %s1711_s28  ;;  %p1719_p11 = scmp.lt.u32.totalorder %s1711_s28, %s2477_s16 }
 0x1db   : > { %p1713_p7 = pnand %p1712_p5, %p2626_p12 }
 0x1dc   : > { %p1718_p6 = por %p1717_p3, %p1716_p1 }
 0x1dd   : > { %p1714_p9 = pneg %p1713_p7 }
 0x1de   : > { %p1720_p13 = por %p1719_p11, %p1718_p6 }
 0x1e0   : > { %p1721_p8 = pnand %p1720_p13, %p1714_p9 }
 0x1e2   : > { %1724 = shalt.err (!%p1721_p8)
}
 0x1e3   : > { %s1769_s13 = smov 128   ;;  %s1770_s19 = smov 8  }
 0x1e4   : > { %1613 = dma.vmem_to_hbm [thread:$0]  (%p2626_p12), %s2479_s20, 2048, %s2477_s16, %s1301_s17, %s1769_s13, %s1769_s13, %s1770_s19  }
 0x1e5   : > { %s267_s1 = scalar_lea.vmem %s2531_s4, %s1921_s6 }
 0x24b   : > { %v731_v35 = vpop.xlane.xlu0 %730 }
 0x24c   : > { %v732_v27 = vrot.slane %v731_v35, 4 }
 0x24e   : > { %v733_v7 = vadd.f32 %v732_v27, %v731_v35 }
 0x250   : > { %v734_v16 = vrot.slane %v733_v7, 2 }
 0x252   : > { %v735_v20 = vadd.f32 %v734_v16, %v733_v7 }
 0x253   : > { %v916_v26 = vpop.xlane.xlu0 %915 }
 0x254   : > { %v917_v1 = vrot.slane %v916_v26, 4  ;;  %v736_v60 = vrot.slane %v735_v20, 1 }
 0x256   : > { %v918_v30 = vadd.f32 %v917_v1, %v916_v26  ;;  %v737_v40 = vadd.f32 %v736_v60, %v735_v20 }
 0x258   : > { %v919_v18 = vrot.slane %v918_v30, 2  ;;  %1603 = vpush %v737_v40 }
 0x25a   : > { %v920_v6 = vadd.f32 %v919_v18, %v918_v30 }
 0x25b   : > { %v1101_v37 = vpop.xlane.xlu0 %1100 }
 0x25c   : > { %v1102_v43 = vrot.slane %v1101_v37, 4  ;;  %v921_v3 = vrot.slane %v920_v6, 1 }
 0x25e   : > { %v1103_v38 = vadd.f32 %v1102_v43, %v1101_v37  ;;  %v922_v13 = vadd.f32 %v921_v3, %v920_v6 }
 0x260   : > { %v1104_v14 = vrot.slane %v1103_v38, 2  ;;  %1605 = vpush %v922_v13 }
 0x262   : > { %v1105_v58 = vadd.f32 %v1104_v14, %v1103_v38 }
 0x263   : > { %v1286_v31 = vpop.xlane.xlu0 %1285 }
 0x264   : > { %v1287_v59 = vrot.slane %v1286_v31, 4  ;;  %v1106_v24 = vrot.slane %v1105_v58, 1 }
 0x266   : > { %v1288_v56 = vadd.f32 %v1287_v59, %v1286_v31  ;;  %v1107_v11 = vadd.f32 %v1106_v24, %v1105_v58 }
 0x268   : > { %v1289_v39 = vrot.slane %v1288_v56, 2  ;;  %1607 = vpush %v1107_v11 }
 0x26a   : > { %v1290_v19 = vadd.f32 %v1289_v39, %v1288_v56 }
 0x26c   : > { %v1291_v32 = vrot.slane %v1290_v19, 1 }
 0x26e   : > { %v1292_v50 = vadd.f32 %v1291_v32, %v1290_v19 }
 0x270   : > { %1609 = vpush %v1292_v50 }
 0x289   : > { %s1604_s7 = spop %1603 }
 0x291   : > { %s1606_s15 = spop %1605 }
 0x292   : > { %s924_s21 = sadd.f32 %s1606_s15, %s1604_s7 }
 0x299   : > { %s1608_s20 = spop %1607 }
 0x29a   : > { %s1109_s14 = sadd.f32 %s1608_s20, %s924_s21 }
 0x2a1   : > { %s1610_s16 = spop %1609 }
 0x2a2   : > { %s1294_s27 = sadd.f32 %s1610_s16, %s1109_s14 }
 0x2a4   : > { %v1295_v0 = vstv %s1294_s27 }
 0x2a5   : > { %1296 = vst [vmem:[%s267_s1] sm:$0x1] %v1295_v0 }
 0x2a6 PF: > { %s1338_s0 = sand.u32 1, %s1751_s22   ;;  %p2627_p12 = scmp.ne.s32.totalorder %s2554_s8, 0 }
 0x2a7   : > { %p2628_p10 = scmp.ge.s32.totalorder %s1763_s25, 2  ;;  %s1339_s28 = scalar_lea.sflag [#allocation8], %s1338_s0 }
 0x2a9   : > { %p1620_p0 = pnand %p2628_p10, %p2627_p12 }
 0x2ab   : > { %1746 = dma.done.wait (!%p1620_p0), %s1339_s28, 2048  }
 0x2ac   : > { %1748 = vsyncadd (!%p1620_p0), %s1339_s28, 4294965248  ;;  %p21_p2 = scmp.ge.s32.totalorder %s1832_s26, 4   ;;  %s2629_s22 = smov %s1755_s23 }
 0x2ad   : > { %s2630_s23 = smov %s1759_s24  ;;  %s2631_s24 = smov %s1844_s29 }
 0x2ae   : > { %s2632_s25 = smov %s1832_s26  ;;  %23 = sbr.rel (!%p21_p2) target bundleno = 8 (0x8), region = 105 }
 0x2b5   :  { %1344 = vsyncpa [#allocation7], 1 }
 0x2b6   :  { %1346 = vsyncpa [#allocation7 + $0x1], 1 }
 0x2b7   :  { %1347 = vsyncpa [#allocation8], 1 }
 0x2b8   :  { %1349 = vsyncpa [#allocation8 + $0x1], 1 }

</bundles_post_ra>
